<compile_context>
chip_gen: v6e
topology: v6e:2x2x1
jax: 0.10.0
libtpu: 0.0.40
codegen_flags: <defaults>
</compile_context>

<pallas_src>
import functools

import jax
import jax.numpy as jnp
from jax.experimental import pallas as pl
from jax.experimental.pallas import tpu as pltpu


# ----------------------------------------------------------------------------
# Tiling helper: largest tile <= pref that divides dim and satisfies the (8,128)
# alignment; falls back to the full dim (always legal for a BlockSpec).
# ----------------------------------------------------------------------------
def _pick_tile(dim, pref, align):
    if dim <= pref:
        return dim
    t = (pref // align) * align
    while t >= align:
        if dim % t == 0:
            return t
        t -= align
    return dim


# ----------------------------------------------------------------------------
# Tiled matmul with fp32 VMEM accumulator (final output projection).
# ----------------------------------------------------------------------------
def _matmul_kernel(a_ref, b_ref, o_ref, acc_ref):
    @pl.when(pl.program_id(2) == 0)
    def _():
        acc_ref[...] = jnp.zeros_like(acc_ref)

    acc_ref[...] += jnp.dot(a_ref[...], b_ref[...],
                            preferred_element_type=jnp.float32)

    @pl.when(pl.program_id(2) == pl.num_programs(2) - 1)
    def _():
        o_ref[...] = acc_ref[...].astype(o_ref.dtype)


def pallas_matmul(a, b, out_dtype=jnp.float32):
    m, k = a.shape
    k2, n = b.shape
    assert k == k2
    tm = _pick_tile(m, 256, 8)
    tn = _pick_tile(n, 256, 128)
    tk = _pick_tile(k, 512, 128)
    grid = (m // tm, n // tn, k // tk)
    return pl.pallas_call(
        _matmul_kernel,
        grid_spec=pltpu.PrefetchScalarGridSpec(
            num_scalar_prefetch=0,
            grid=grid,
            in_specs=[pl.BlockSpec((tm, tk), lambda i, j, l: (i, l)),
                      pl.BlockSpec((tk, tn), lambda i, j, l: (l, j))],
            out_specs=pl.BlockSpec((tm, tn), lambda i, j, l: (i, j)),
            scratch_shapes=[pltpu.VMEM((tm, tn), jnp.float32)]),
        out_shape=jax.ShapeDtypeStruct((m, n), out_dtype),
        compiler_params=pltpu.CompilerParams(
            dimension_semantics=("parallel", "parallel", "arbitrary")),
    )(a, b)


# ----------------------------------------------------------------------------
# Fused 5-way token-mix LoRA + blend:
#   xs_i = x + xx * (time_maa_i + tanh(xm @ W1_i) @ W2_i),  i in slot order k,v,r,g,w.
# Grid = (M//tm, 5): the x/xx/xm tiles keep the same block index across the inner
# slot axis, so Pallas does not re-DMA them; output is bf16, ready for the MXU.
# ----------------------------------------------------------------------------
def _mix_lora_kernel(xm_ref, x_ref, xx_ref, maa_ref, w1_ref, w2_ref, o_ref):
    t = jnp.tanh(jnp.dot(xm_ref[...], w1_ref[0],
                         preferred_element_type=jnp.float32))
    m = jnp.dot(t.astype(w2_ref.dtype), w2_ref[0],
                preferred_element_type=jnp.float32)
    blend = x_ref[...].astype(jnp.float32) + xx_ref[...].astype(jnp.float32) * (
        maa_ref[0].astype(jnp.float32) + m)
    o_ref[0] = blend.astype(o_ref.dtype)


def mix_lora_blend(xm, x, xx, maa, w1, w2, out_dtype=jnp.bfloat16):
    """xm: (M,C) bf16; x/xx: (M,C) f32; maa: (5,1,C) f32; w1: (5,C,D) bf16;
    w2: (5,D,C) bf16 -> (5, M, C) bf16 stack."""
    M, C = xm.shape
    S, _, D = w1.shape
    tm = _pick_tile(M, 256, 8)
    # TODO(synk): add K-tiling over C for very large n_embd (single (tm, C) block here).
    return pl.pallas_call(
        _mix_lora_kernel,
        grid_spec=pltpu.PrefetchScalarGridSpec(
            num_scalar_prefetch=0,
            grid=(M // tm, S),
            in_specs=[pl.BlockSpec((tm, C), lambda i, s: (i, 0)),
                      pl.BlockSpec((tm, C), lambda i, s: (i, 0)),
                      pl.BlockSpec((tm, C), lambda i, s: (i, 0)),
                      pl.BlockSpec((1, 1, C), lambda i, s: (s, 0, 0)),
                      pl.BlockSpec((1, C, D), lambda i, s: (s, 0, 0)),
                      pl.BlockSpec((1, D, C), lambda i, s: (s, 0, 0))],
            out_specs=pl.BlockSpec((1, tm, C), lambda i, s: (s, i, 0))),
        out_shape=jax.ShapeDtypeStruct((S, M, C), out_dtype),
        compiler_params=pltpu.CompilerParams(
            dimension_semantics=("parallel", "parallel")),
    )(xm, x, xx, maa, w1, w2)


# ----------------------------------------------------------------------------
# Batched projection:  out[p] = xs[p] @ W[p]  for p = 0..P-1 (slot p of the mix
# stack with weight p) -- one pallas_call replaces 4 Linear kernels; no slicing
# copies of the stacked input.
# ----------------------------------------------------------------------------
def _bproj_kernel(a_ref, b_ref, o_ref, acc_ref):
    @pl.when(pl.program_id(3) == 0)
    def _():
        acc_ref[...] = jnp.zeros_like(acc_ref)

    acc_ref[...] += jnp.dot(a_ref[0], b_ref[0],
                            preferred_element_type=jnp.float32)

    @pl.when(pl.program_id(3) == pl.num_programs(3) - 1)
    def _():
        o_ref[0] = acc_ref[...].astype(o_ref.dtype)


def proj_batched(xs, w_stack, out_dtype=jnp.bfloat16):
    """xs: (S, M, C) bf16 (slots 0..P-1 consumed in order); w_stack: (P, C, N) bf16
    -> (P, M, N)."""
    S, M, C = xs.shape
    P, _, N = w_stack.shape
    assert P <= S
    tm = _pick_tile(M, 256, 8)
    tn = _pick_tile(N, 256, 128)
    tk = _pick_tile(C, 512, 128)
    return pl.pallas_call(
        _bproj_kernel,
        grid_spec=pltpu.PrefetchScalarGridSpec(
            num_scalar_prefetch=0,
            grid=(P, M // tm, N // tn, C // tk),
            in_specs=[pl.BlockSpec((1, tm, tk), lambda s, i, j, l: (s, i, l)),
                      pl.BlockSpec((1, tk, tn), lambda s, i, j, l: (s, l, j))],
            out_specs=pl.BlockSpec((1, tm, tn), lambda s, i, j, l: (s, i, j)),
            scratch_shapes=[pltpu.VMEM((tm, tn), jnp.float32)]),
        out_shape=jax.ShapeDtypeStruct((P, M, N), out_dtype),
        compiler_params=pltpu.CompilerParams(
            dimension_semantics=("parallel", "parallel", "parallel", "arbitrary")),
    )(xs, w_stack)


# ----------------------------------------------------------------------------
# Fused decay LoRA:  w = time_decay + tanh(xw @ w1) @ w2,  xw = slot `slot` of xs.
# ----------------------------------------------------------------------------
def _decay_lora_kernel(x_ref, w1_ref, w2_ref, td_ref, o_ref):
    t = jnp.tanh(jnp.dot(x_ref[0], w1_ref[...],
                         preferred_element_type=jnp.float32))
    ww = jnp.dot(t.astype(w2_ref.dtype), w2_ref[...],
                 preferred_element_type=jnp.float32)
    o_ref[...] = (ww + td_ref[...].astype(jnp.float32)).astype(o_ref.dtype)


def decay_lora(xs, slot, w1, w2, time_decay, out_dtype=jnp.bfloat16):
    S, M, C = xs.shape
    _, D = w1.shape
    tm = _pick_tile(M, 256, 8)
    return pl.pallas_call(
        _decay_lora_kernel,
        grid_spec=pltpu.PrefetchScalarGridSpec(
            num_scalar_prefetch=0,
            grid=(M // tm,),
            in_specs=[pl.BlockSpec((1, tm, C), lambda i: (slot, i, 0)),
                      pl.BlockSpec((C, D), lambda i: (0, 0)),
                      pl.BlockSpec((D, C), lambda i: (0, 0)),
                      pl.BlockSpec((1, C), lambda i: (0, 0))],
            out_specs=pl.BlockSpec((tm, C), lambda i: (i, 0))),
        out_shape=jax.ShapeDtypeStruct((M, C), out_dtype),
        compiler_params=pltpu.CompilerParams(
            dimension_semantics=("parallel",)),
    )(xs, w1, w2, time_decay)


# ----------------------------------------------------------------------------
# WKV6-with-state, chunked linear-attention form.
# Grid = (B, T//Tc); one program handles all heads of one (batch, chunk) with
# lane-dense (Tc, C) blocks.  Per head h (static loop, static lane slices):
#   y      = (r*Din) @ S0^T  +  mask_causal((r*Din)@(k/Din1)^T, diag=u-bonus) @ v
#   S_end  = S0 * Dtot  +  v^T @ (k*Dout)
# with Din/Dout/Dtot the cumulative exp(-exp(w)) decays inside the chunk.
# State is carried across chunks in an fp32 VMEM scratch.
# ----------------------------------------------------------------------------
def _wkv6_chunk_kernel(r_ref, k_ref, v_ref, w_ref, u_ref, s0_ref,
                       y_ref, sout_ref, state_ref, *, n_head, head_size):
    H, N = n_head, head_size
    c = pl.program_id(1)

    @pl.when(c == 0)
    def _():
        state_ref[...] = s0_ref[...].astype(jnp.float32)

    r = r_ref[0, 0].astype(jnp.float32)        # (Tc, C)
    k = k_ref[0, 0].astype(jnp.float32)
    v = v_ref[0, 0].astype(jnp.float32)
    w = w_ref[0].astype(jnp.float32)
    u = u_ref[...].astype(jnp.float32)         # (1, C)

    Tc = r.shape[0]

    # per-step log decay lw = -exp(w) <= 0; inclusive cumsum via a small matmul
    # (guaranteed lowering, runs on the MXU).
    lw = -jnp.exp(w)                                               # (Tc, C)
    ti = jax.lax.broadcasted_iota(jnp.int32, (Tc, Tc), 0)
    si = jax.lax.broadcasted_iota(jnp.int32, (Tc, Tc), 1)
    incl = (ti >= si).astype(jnp.float32)
    cum = jnp.dot(incl, lw, preferred_element_type=jnp.float32)    # sum_{s<=t} lw

    d_in = jnp.exp(cum - lw)                    # decay of S0 seen at step t (<=1)
    d_out = jnp.exp(cum[Tc - 1:Tc, :] - cum)    # decay from step t to chunk end (<=1)
    d_tot = jnp.exp(cum[Tc - 1:Tc, :])          # (1, C) total chunk decay (<=1)

    r_in = r * d_in
    # exp(-cum) can be large; bounded by exp(Tc * max exp(w)) -> keep Tc modest (<=32).
    k_in = k * jnp.exp(-cum)
    k_end = k * d_out
    ru_k = r * u * k

    mask_lo = ti > si
    mask_dg = ti == si
    dn_t = (((1,), (1,)), ((), ()))             # contract last dims   (A @ B^T)
    dn_f = (((0,), (0,)), ((), ()))             # contract first dims  (A^T @ B)

    y_heads = []
    # TODO(synk): for very large n_head, replace the static unroll with a fori_loop
    # over head blocks (dynamic lane slicing) to bound program size.
    for h in range(H):
        sl = slice(h * N, (h + 1) * N)
        S0 = state_ref[h]                       # (N, N)  S[value i, key j]
        r_h, v_h = r_in[:, sl], v[:, sl]

        # inter-chunk contribution: y[t,i] = sum_j r_in[t,j] * S0[i,j]
        y_h = jax.lax.dot_general(r_h, S0, dn_t,
                                  preferred_element_type=jnp.float32)

        # intra-chunk causal scores; u-bonus on the diagonal
        A = jax.lax.dot_general(r_h, k_in[:, sl], dn_t,
                                preferred_element_type=jnp.float32)  # (Tc, Tc)
        a_h = jnp.sum(ru_k[:, sl], axis=-1, keepdims=True)           # (Tc, 1)
        A = jnp.where(mask_lo, A, 0.0) + jnp.where(mask_dg, a_h, 0.0)
        y_h = y_h + jnp.dot(A, v_h, preferred_element_type=jnp.float32)
        y_heads.append(y_h)

        # chunk-end state: S_end = S0 * d_tot + v^T @ k_end
        dS = jax.lax.dot_general(v_h, k_end[:, sl], dn_f,
                                 preferred_element_type=jnp.float32)  # (N, N)
        state_ref[h] = S0 * d_tot[:, sl] + dS

    # single lane-dense store of the whole (Tc, C) chunk
    y_ref[0] = jnp.concatenate(y_heads, axis=-1).astype(y_ref.dtype)

    @pl.when(c == pl.num_programs(1) - 1)
    def _():
        sout_ref[0] = state_ref[...].astype(sout_ref.dtype)


def wkv6_forward(rkv, w, u, s0, *, n_head, head_size,
                 r_slot, k_slot, v_slot, chunk_t=16):
    """rkv: (S,B,T,C) bf16 stack holding r/k/v at the given slots; w: (B,T,C) bf16,
    u: (1,C) bf16, s0: (H,N,N) f32 (shared over batch)."""
    _, B, T, C = rkv.shape
    H, N = n_head, head_size
    assert C == H * N
    Tc = min(chunk_t, T)
    assert T % Tc == 0, "T must be divisible by the chunk size"
    n_chunks = T // Tc

    stk_spec = lambda slot: pl.BlockSpec((1, 1, Tc, C),
                                         lambda b, c, s=slot: (s, b, c, 0))
    seq_spec = pl.BlockSpec((1, Tc, C), lambda b, c: (b, c, 0))
    kernel = functools.partial(_wkv6_chunk_kernel, n_head=H, head_size=N)
    grid_spec = pltpu.PrefetchScalarGridSpec(
        num_scalar_prefetch=0,
        grid=(B, n_chunks),
        in_specs=[stk_spec(r_slot), stk_spec(k_slot), stk_spec(v_slot),
                  seq_spec,                                            # w
                  pl.BlockSpec((1, C), lambda b, c: (0, 0)),           # u
                  pl.BlockSpec((H, N, N), lambda b, c: (0, 0, 0))],    # s0 (bcast over B)
        out_specs=[seq_spec,
                   pl.BlockSpec((1, H, N, N), lambda b, c: (b, 0, 0, 0))],
        scratch_shapes=[pltpu.VMEM((H, N, N), jnp.float32)],           # fp32 running state
    )
    y, s_out = pl.pallas_call(
        kernel,
        grid_spec=grid_spec,
        out_shape=(jax.ShapeDtypeStruct((B, T, C), jnp.bfloat16),
                   jax.ShapeDtypeStruct((B, H, N, N), jnp.bfloat16)),
        compiler_params=pltpu.CompilerParams(
            dimension_semantics=("parallel", "arbitrary")),
    )(rkv, rkv, rkv, w, u, s0)
    return y, s_out


# ----------------------------------------------------------------------------
# GroupNorm (n_head groups) + SiLU(gate) multiply, fused, lane-dense over C.
# The gate is read straight from slot `g_slot` of the projection stack (no copy).
# Per-head mean/var via tiny segment matmuls (no per-head reshape, no broadcast
# materialization of gamma/beta).
# ----------------------------------------------------------------------------
def _gn_gate_kernel(y_ref, g_ref, seg_ref, w_ref, b_ref, o_ref, *, inv_n, eps):
    x = y_ref[...].astype(jnp.float32)          # (rows, C)
    gz = g_ref[0].astype(jnp.float32)
    seg = seg_ref[...]                          # (C, H) one-hot head membership
    dn = (((1,), (1,)), ((), ()))

    mean_h = jnp.dot(x, seg, preferred_element_type=jnp.float32) * inv_n
    mean = jax.lax.dot_general(mean_h, seg, dn, preferred_element_type=jnp.float32)
    xc = x - mean
    var_h = jnp.dot(xc * xc, seg, preferred_element_type=jnp.float32) * inv_n
    var = jax.lax.dot_general(var_h, seg, dn, preferred_element_type=jnp.float32)

    y = xc * jax.lax.rsqrt(var + eps)
    y = y * w_ref[...].astype(jnp.float32) + b_ref[...].astype(jnp.float32)
    gate = gz * jax.nn.sigmoid(gz)              # SiLU fused here
    o_ref[...] = (y * gate).astype(o_ref.dtype)


def pallas_gn_gate(y, gstack, g_slot, gamma, beta, *, n_head, head_size, eps,
                   out_dtype=jnp.bfloat16):
    M, C = y.shape
    seg = (jnp.arange(C)[:, None] // head_size ==
           jnp.arange(n_head)[None, :]).astype(jnp.float32)           # (C, H)
    tm = _pick_tile(M, 512, 8)
    kernel = functools.partial(_gn_gate_kernel, inv_n=1.0 / head_size, eps=eps)
    return pl.pallas_call(
        kernel,
        grid_spec=pltpu.PrefetchScalarGridSpec(
            num_scalar_prefetch=0,
            grid=(M // tm,),
            in_specs=[pl.BlockSpec((tm, C), lambda i: (i, 0)),
                      pl.BlockSpec((1, tm, C), lambda i: (g_slot, i, 0)),
                      pl.BlockSpec((C, n_head), lambda i: (0, 0)),
                      pl.BlockSpec((1, C), lambda i: (0, 0)),
                      pl.BlockSpec((1, C), lambda i: (0, 0))],
            out_specs=pl.BlockSpec((tm, C), lambda i: (i, 0))),
        out_shape=jax.ShapeDtypeStruct((M, C), out_dtype),
        compiler_params=pltpu.CompilerParams(
            dimension_semantics=("parallel",)),
    )(y, gstack, seg, gamma.reshape(1, C), beta.reshape(1, C))


# ----------------------------------------------------------------------------
# Full TimeMix forward (training path: token-shift pads with zeros, initial WKV
# state = time_state shared over batch).
# ----------------------------------------------------------------------------
# TODO(synk): the reference WKV_6STATE.forward overwrites `s` with an *uninitialized*
# torch.empty tensor before the CUDA kernel (apparent bug); the intended initial state
# (time_state) is used here.
# TODO(synk): custom-autograd backward, inference-mode state_in/shift_state buffers,
# and the LoraLinear branch are not implemented (forward only).
@functools.partial(jax.jit, static_argnames=("n_head", "head_size", "eps", "chunk_t"))
def time_mix_forward(params, x, *, n_head, head_size, eps, chunk_t=16):
    B, T, C = x.shape
    H, N = n_head, head_size
    BT = B * T
    bf = jnp.bfloat16

    # token shift: x_prev[t] = x[t-1], x_prev[0] = 0   (ZeroPad2d((0,0,1,-1)))
    x_prev = jnp.concatenate([jnp.zeros_like(x[:, :1]), x[:, :-1]], axis=1)
    xx = x_prev - x
    xm = (x + xx * params["time_maa_x"]).reshape(BT, C).astype(bf)

    # stack order (k, v, r, g, w): slots 0..3 feed the 4 projections in order,
    # slot 4 feeds the decay LoRA.  Native parameter order is (w, k, v, r, g).
    D_mix = params["time_maa_w2"].shape[1]
    perm = jnp.array([1, 2, 3, 4, 0], dtype=jnp.int32)
    w1_nat = params["time_maa_w1"].reshape(C, 5, D_mix).transpose(1, 0, 2)   # (5,C,D)
    w1_s = jnp.take(w1_nat, perm, axis=0).astype(bf)
    w2_s = jnp.take(params["time_maa_w2"], perm, axis=0).astype(bf)
    maa_s = jnp.concatenate(
        [params["time_maa_k"], params["time_maa_v"], params["time_maa_r"],
         params["time_maa_g"], params["time_maa_w"]], axis=0)                # (5,1,C)

    xs = mix_lora_blend(xm, x.reshape(BT, C), xx.reshape(BT, C),
                        maa_s, w1_s, w2_s)                                   # (5,BT,C) bf16

    # fused key/value/receptance/gate projections -> (4, BT, C) stack (k, v, r, g)
    w_proj = jnp.stack([params["W_k"].T, params["W_v"].T,
                        params["W_r"].T, params["W_g"].T]).astype(bf)        # (4,C,C)
    proj = proj_batched(xs, w_proj)                                          # (4,BT,C)

    # decay w from slot 4 (xw)
    w = decay_lora(xs, 4, params["time_decay_w1"].astype(bf),
                   params["time_decay_w2"].astype(bf),
                   params["time_decay"].reshape(1, C), out_dtype=bf)

    y, s_out = wkv6_forward(
        proj.reshape(4, B, T, C), w.reshape(B, T, C),
        params["time_faaaa"].reshape(1, C).astype(bf),
        params["time_state"].astype(jnp.float32),
        n_head=H, head_size=N, r_slot=2, k_slot=0, v_slot=1, chunk_t=chunk_t)

    xo = pallas_gn_gate(y.reshape(BT, C), proj, 3, params["ln_w"], params["ln_b"],
                        n_head=H, head_size=N, eps=eps)                      # bf16
    out = pallas_matmul(xo, params["W_o"].T.astype(bf), jnp.float32)
    return out.reshape(B, T, C), s_out


# ----------------------------------------------------------------------------
# Pure-JAX sequential reference for the WKV6 recurrence (correctness check).
# ----------------------------------------------------------------------------
def _wkv6_reference(r, k, v, w, u, s0):
    B, T, C = r.shape
    H = s0.shape[0]
    N = C // H
    rr = r.reshape(B, T, H, N)
    kk = k.reshape(B, T, H, N)
    vv = v.reshape(B, T, H, N)
    wd = jnp.exp(-jnp.exp(w.reshape(B, T, H, N)))
    uu = u.reshape(H, N)
    S = jnp.broadcast_to(s0[None], (B, H, N, N)).astype(jnp.float32)
    ys = []
    for t in range(T):
        rt, kt, vt, dt = rr[:, t], kk[:, t], vv[:, t], wd[:, t]
        at = jnp.sum(rt * uu[None] * kt, axis=-1, keepdims=True)
        ys.append(jnp.einsum("bhj,bhij->bhi", rt, S) + vt * at)
        S = S * dt[:, :, None, :] + vt[..., :, None] * kt[..., None, :]
    return jnp.stack(ys, axis=1).reshape(B, T, C), S


# ----------------------------------------------------------------------------
# Deterministic parameter construction following TimeMix.__init__ shapes.
# ----------------------------------------------------------------------------
def init_params(key, *, n_embd, dim_att, n_head, head_size, n_layer, layer_id):
    D_MIX_LORA, D_DECAY_LORA = 32, 64
    r01 = layer_id / (n_layer - 1)
    r1a0 = 1.0 - layer_id / n_layer

    ddd = (jnp.arange(n_embd, dtype=jnp.float32) / n_embd).reshape(1, 1, n_embd)
    n = jnp.arange(dim_att, dtype=jnp.float32)
    decay_speed = -6.0 + 5.0 * (n / (dim_att - 1)) ** (0.7 + 1.3 * r01)
    zigzag = ((n + 1) % 3 - 1) * 0.1
    tfaaaa = r01 * (1.0 - n / (dim_att - 1)) + zigzag

    keys = jax.random.split(key, 10)

    def uni(kk, shape, a):
        return jax.random.uniform(kk, shape, jnp.float32, -a, a)

    lin_bound = 1.0 / (n_embd ** 0.5)
    return dict(
        time_maa_x=1.0 - ddd ** r1a0,
        time_maa_w=1.0 - ddd ** r1a0,
        time_maa_k=1.0 - ddd ** r1a0,
        time_maa_v=1.0 - (ddd ** r1a0 + 0.3 * r01),
        time_maa_r=1.0 - ddd ** (0.5 * r1a0),
        time_maa_g=1.0 - ddd ** (0.5 * r1a0),
        # reference inits these LoRA "A" matrices to zeros; small uniform values
        # keep the kernel path numerically non-trivial.
        time_maa_w1=uni(keys[0], (n_embd, D_MIX_LORA * 5), 0.01),
        time_maa_w2=uni(keys[1], (5, D_MIX_LORA, n_embd), 0.01),
        time_decay=decay_speed.reshape(1, 1, dim_att),
        time_decay_w1=uni(keys[2], (n_embd, D_DECAY_LORA), 0.01),
        time_decay_w2=uni(keys[3], (D_DECAY_LORA, dim_att), 0.01),
        time_faaaa=tfaaaa.reshape(n_head, head_size),
        # reference inits time_state to zeros; small values exercise the state path.
        time_state=0.1 * jax.random.normal(
            keys[4], (n_head, head_size, head_size), jnp.float32),
        W_r=uni(keys[5], (dim_att, n_embd), lin_bound),
        W_k=uni(keys[6], (dim_att, n_embd), lin_bound),
        W_v=uni(keys[7], (dim_att, n_embd), lin_bound),
        W_g=uni(keys[8], (dim_att, n_embd), lin_bound),
        W_o=uni(keys[9], (n_embd, dim_att), lin_bound),
        ln_w=jnp.ones((dim_att,), jnp.float32),
        ln_b=jnp.zeros((dim_att,), jnp.float32),
    )


if __name__ == "__main__":
    # Small config consistent with the module:
    B, T = 2, 8
    n_embd = 64
    head_size = 32                 # HEAD_SIZE (RWKV_HEAD_SIZE_A)
    n_head = n_embd // head_size   # 2
    dim_att = n_embd
    n_layer, layer_id = 4, 1
    head_size_divisor = 8
    eps = 1e-5 * head_size_divisor ** 2

    key = jax.random.PRNGKey(0)
    k_param, k_x, k_r, k_k, k_v, k_w, k_u, k_s = jax.random.split(key, 8)

    # --- standalone check: chunked WKV6 kernel vs sequential reference (2 chunks) ---
    Bt, Tt, H, N = 2, 16, n_head, head_size
    Ct = H * N
    r_t = (0.5 * jax.random.normal(k_r, (Bt, Tt, Ct))).astype(jnp.bfloat16)
    k_t = (0.5 * jax.random.normal(k_k, (Bt, Tt, Ct))).astype(jnp.bfloat16)
    v_t = (0.5 * jax.random.normal(k_v, (Bt, Tt, Ct))).astype(jnp.bfloat16)
    w_t = (-0.5 - jnp.abs(jax.random.normal(k_w, (Bt, Tt, Ct)))).astype(jnp.bfloat16)
    u_t = (0.3 * jax.random.normal(k_u, (1, Ct))).astype(jnp.bfloat16)
    s0_t = 0.3 * jax.random.normal(k_s, (H, N, N), jnp.float32)
    rkv_t = jnp.stack([r_t, k_t, v_t])                     # (3, B, T, C)

    wkv_fn = jax.jit(functools.partial(wkv6_forward, n_head=H, head_size=N,
                                       r_slot=0, k_slot=1, v_slot=2, chunk_t=8))
    y_k, s_k = wkv_fn(rkv_t, w_t, u_t, s0_t)
    jax.block_until_ready((y_k, s_k))
    y_ref, s_ref = _wkv6_reference(
        r_t.astype(jnp.float32), k_t.astype(jnp.float32), v_t.astype(jnp.float32),
        w_t.astype(jnp.float32), u_t.astype(jnp.float32).reshape(-1), s0_t)
    assert bool(jnp.allclose(y_k.astype(jnp.float32), y_ref, rtol=5e-2, atol=1e-1))
    assert bool(jnp.allclose(s_k.astype(jnp.float32), s_ref, rtol=5e-2, atol=1e-1))

    # --- full TimeMix forward ---
    params = init_params(k_param, n_embd=n_embd, dim_att=dim_att,
                         n_head=n_head, head_size=head_size,
                         n_layer=n_layer, layer_id=layer_id)
    x = jax.random.normal(k_x, (B, T, n_embd), dtype=jnp.float32)

    out, s_out = time_mix_forward(params, x, n_head=n_head,
                                  head_size=head_size, eps=eps)
    jax.block_until_ready((out, s_out))

    assert out.shape == (B, T, n_embd)
    assert s_out.shape == (B, n_head, head_size, head_size)
    assert out.dtype == jnp.float32 and s_out.dtype == jnp.bfloat16
    assert bool(jnp.all(jnp.isfinite(out)))
    print("KERNEL_OK")
</pallas_src>

<mosaic_0001>
module attributes {stable_mosaic.version = 11 : i64} {
  func.func @_wkv6_chunk_kernel(%arg0: i32, %arg1: i32, %arg2: memref<1x1x8x64xbf16, #tpu.memory_space<vmem>>, %arg3: memref<1x1x8x64xbf16, #tpu.memory_space<vmem>>, %arg4: memref<1x1x8x64xbf16, #tpu.memory_space<vmem>>, %arg5: memref<1x8x64xbf16, #tpu.memory_space<vmem>>, %arg6: memref<1x64xbf16, #tpu.memory_space<vmem>>, %arg7: memref<2x32x32xf32, #tpu.memory_space<vmem>>, %arg8: memref<1x8x64xbf16, #tpu.memory_space<vmem>>, %arg9: memref<1x2x32x32xbf16, #tpu.memory_space<vmem>>, %arg10: memref<2x32x32xf32, #tpu.memory_space<vmem>>) attributes {dimension_semantics = [#tpu.dimension_semantics<parallel>, #tpu.dimension_semantics<arbitrary>], iteration_bounds = array<i64: 2, 2>, scalar_prefetch = 0 : i64, scratch_operands = 1 : i64, tpu.core_type = #tpu.core_type<tc>, window_params = [{transform_indices = @transform_0, window_bounds = array<i64: 1, 1, 8, 64>}, {transform_indices = @transform_1, window_bounds = array<i64: 1, 1, 8, 64>}, {transform_indices = @transform_2, window_bounds = array<i64: 1, 1, 8, 64>}, {transform_indices = @transform_3, window_bounds = array<i64: 1, 8, 64>}, {pipeline_mode = #tpu.pipeline_mode<synchronous>, transform_indices = @transform_4, window_bounds = array<i64: 1, 64>}, {pipeline_mode = #tpu.pipeline_mode<synchronous>, transform_indices = @transform_5, window_bounds = array<i64: 2, 32, 32>}, {transform_indices = @transform_6, window_bounds = array<i64: 1, 8, 64>}, {transform_indices = @transform_7, window_bounds = array<i64: 1, 2, 32, 32>}]} {
    %c0_i32 = arith.constant 0 : i32
    %0 = arith.cmpi eq, %arg1, %c0_i32 : i32
    %1 = arith.extui %0 : i1 to i32
    %c0_i32_0 = arith.constant 0 : i32
    %2 = arith.cmpi ne, %1, %c0_i32_0 : i32
    scf.if %2 {
      %c0_48 = arith.constant 0 : index
      %c0_49 = arith.constant 0 : index
      %c0_50 = arith.constant 0 : index
      %109 = vector.load %arg7[%c0_48, %c0_49, %c0_50] : memref<2x32x32xf32, #tpu.memory_space<vmem>>, vector<2x32x32xf32>
      %c0_51 = arith.constant 0 : index
      %c0_52 = arith.constant 0 : index
      %c0_53 = arith.constant 0 : index
      %110 = vector.load %arg10[%c0_51, %c0_52, %c0_53] : memref<2x32x32xf32, #tpu.memory_space<vmem>>, vector<2x32x32xf32>
      tpu.vector_store %arg10[%c0_51, %c0_52, %c0_53], %109 {strides = array<i32>} : memref<2x32x32xf32, #tpu.memory_space<vmem>>, vector<2x32x32xf32>,
    } else {
    }
    %c0 = arith.constant 0 : index
    %c0_1 = arith.constant 0 : index
    %c0_2 = arith.constant 0 : index
    %c0_3 = arith.constant 0 : index
    %3 = vector.load %arg2[%c0, %c0_1, %c0_2, %c0_3] : memref<1x1x8x64xbf16, #tpu.memory_space<vmem>>, vector<1x1x8x64xbf16>
    %4 = vector.shape_cast %3 : vector<1x1x8x64xbf16> to vector<8x64xbf16>
    %5 = arith.extf %4 : vector<8x64xbf16> to vector<8x64xf32>
    %c0_4 = arith.constant 0 : index
    %c0_5 = arith.constant 0 : index
    %c0_6 = arith.constant 0 : index
    %c0_7 = arith.constant 0 : index
    %6 = vector.load %arg3[%c0_4, %c0_5, %c0_6, %c0_7] : memref<1x1x8x64xbf16, #tpu.memory_space<vmem>>, vector<1x1x8x64xbf16>
    %7 = vector.shape_cast %6 : vector<1x1x8x64xbf16> to vector<8x64xbf16>
    %8 = arith.extf %7 : vector<8x64xbf16> to vector<8x64xf32>
    %c0_8 = arith.constant 0 : index
    %c0_9 = arith.constant 0 : index
    %c0_10 = arith.constant 0 : index
    %c0_11 = arith.constant 0 : index
    %9 = vector.load %arg4[%c0_8, %c0_9, %c0_10, %c0_11] : memref<1x1x8x64xbf16, #tpu.memory_space<vmem>>, vector<1x1x8x64xbf16>
    %10 = vector.shape_cast %9 : vector<1x1x8x64xbf16> to vector<8x64xbf16>
    %11 = arith.extf %10 : vector<8x64xbf16> to vector<8x64xf32>
    %c0_12 = arith.constant 0 : index
    %c0_13 = arith.constant 0 : index
    %c0_14 = arith.constant 0 : index
    %12 = vector.load %arg5[%c0_12, %c0_13, %c0_14] : memref<1x8x64xbf16, #tpu.memory_space<vmem>>, vector<1x8x64xbf16>
    %13 = vector.shape_cast %12 : vector<1x8x64xbf16> to vector<8x64xbf16>
    %14 = arith.extf %13 : vector<8x64xbf16> to vector<8x64xf32>
    %c0_15 = arith.constant 0 : index
    %c0_16 = arith.constant 0 : index
    %15 = vector.load %arg6[%c0_15, %c0_16] : memref<1x64xbf16, #tpu.memory_space<vmem>>, vector<1x64xbf16>
    %16 = arith.extf %15 : vector<1x64xbf16> to vector<1x64xf32>
    %17 = math.exp %14 : vector<8x64xf32>
    %cst = arith.constant 0.000000e+00 : f32
    %18 = vector.broadcast %cst : f32 to vector<8x64xf32>
    %19 = arith.subf %18, %17 : vector<8x64xf32>
    %20 = tpu.iota {dimensions = array<i32: 0>} : vector<8x8xi32>
    %21 = tpu.iota {dimensions = array<i32: 1>} : vector<8x8xi32>
    %22 = arith.cmpi sge, %20, %21 : vector<8x8xi32>
    %23 = arith.extui %22 : vector<8x8xi1> to vector<8x8xi32>
    %24 = arith.sitofp %23 : vector<8x8xi32> to vector<8x8xf32>
    %cst_17 = arith.constant dense<0.000000e+00> : vector<8x64xf32>
    %25 = tpu.matmul %24, %19, %cst_17 {dimension_numbers = #tpu.dot_dimension_numbers<[1], [0], [0], [1], [0, 0, 1, 1], [], []>} : vector<8x8xf32>, vector<8x64xf32>, vector<8x64xf32> -> vector<8x64xf32>
    %26 = arith.subf %25, %19 : vector<8x64xf32>
    %27 = math.exp %26 : vector<8x64xf32>
    %28 = vector.extract_strided_slice %25 {offsets = [7, 0], sizes = [1, 64], strides = [1, 1]} : vector<8x64xf32> to vector<1x64xf32>
    %29 = vector.broadcast %28 : vector<1x64xf32> to vector<8x64xf32>
    %30 = arith.subf %29, %25 : vector<8x64xf32>
    %31 = math.exp %30 : vector<8x64xf32>
    %32 = vector.extract_strided_slice %25 {offsets = [7, 0], sizes = [1, 64], strides = [1, 1]} : vector<8x64xf32> to vector<1x64xf32>
    %33 = math.exp %32 : vector<1x64xf32>
    %34 = arith.mulf %5, %27 : vector<8x64xf32>
    %cst_18 = arith.constant 0.000000e+00 : f32
    %35 = vector.broadcast %cst_18 : f32 to vector<8x64xf32>
    %36 = arith.subf %35, %25 : vector<8x64xf32>
    %37 = math.exp %36 : vector<8x64xf32>
    %38 = arith.mulf %8, %37 : vector<8x64xf32>
    %39 = arith.mulf %8, %31 : vector<8x64xf32>
    %40 = vector.broadcast %16 : vector<1x64xf32> to vector<8x64xf32>
    %41 = arith.mulf %5, %40 : vector<8x64xf32>
    %42 = arith.mulf %41, %8 : vector<8x64xf32>
    %43 = arith.cmpi sgt, %20, %21 : vector<8x8xi32>
    %44 = arith.cmpi eq, %20, %21 : vector<8x8xi32>
    %c0_19 = arith.constant 0 : index
    %c0_20 = arith.constant 0 : index
    %c0_21 = arith.constant 0 : index
    %45 = vector.load %arg10[%c0_19, %c0_20, %c0_21] : memref<2x32x32xf32, #tpu.memory_space<vmem>>, vector<1x32x32xf32>
    %46 = vector.shape_cast %45 : vector<1x32x32xf32> to vector<32x32xf32>
    %47 = vector.extract_strided_slice %34 {offsets = [0, 0], sizes = [8, 32], strides = [1, 1]} : vector<8x64xf32> to vector<8x32xf32>
    %48 = vector.extract_strided_slice %11 {offsets = [0, 0], sizes = [8, 32], strides = [1, 1]} : vector<8x64xf32> to vector<8x32xf32>
    %cst_22 = arith.constant dense<0.000000e+00> : vector<8x32xf32>
    %49 = tpu.matmul %47, %46, %cst_22 {dimension_numbers = #tpu.dot_dimension_numbers<[1], [1], [0], [0], [0, 0, 1, 0], [], []>} : vector<8x32xf32>, vector<32x32xf32>, vector<8x32xf32> -> vector<8x32xf32>
    %50 = vector.extract_strided_slice %38 {offsets = [0, 0], sizes = [8, 32], strides = [1, 1]} : vector<8x64xf32> to vector<8x32xf32>
    %cst_23 = arith.constant dense<0.000000e+00> : vector<8x8xf32>
    %51 = tpu.matmul %47, %50, %cst_23 {dimension_numbers = #tpu.dot_dimension_numbers<[1], [1], [0], [0], [0, 0, 1, 0], [], []>} : vector<8x32xf32>, vector<8x32xf32>, vector<8x8xf32> -> vector<8x8xf32>
    %52 = vector.extract_strided_slice %42 {offsets = [0, 0], sizes = [8, 32], strides = [1, 1]} : vector<8x64xf32> to vector<8x32xf32>
    %cst_24 = arith.constant dense<0.000000e+00> : vector<8xf32>
    %53 = vector.multi_reduction <add>, %52, %cst_24 [1] : vector<8x32xf32> to vector<8xf32>
    %54 = vector.shape_cast %53 : vector<8xf32> to vector<8x1xf32>
    %cst_25 = arith.constant 0.000000e+00 : f32
    %55 = vector.broadcast %cst_25 : f32 to vector<8x8xf32>
    %56 = arith.select %43, %51, %55 : vector<8x8xi1>, vector<8x8xf32>
    %cst_26 = arith.constant 0.000000e+00 : f32
    %57 = vector.shape_cast %54 : vector<8x1xf32> to vector<8x1xf32>
    %58 = vector.broadcast %57 : vector<8x1xf32> to vector<8x8xf32>
    %59 = vector.broadcast %cst_26 : f32 to vector<8x8xf32>
    %60 = arith.select %44, %58, %59 : vector<8x8xi1>, vector<8x8xf32>
    %61 = arith.addf %56, %60 : vector<8x8xf32>
    %cst_27 = arith.constant dense<0.000000e+00> : vector<8x32xf32>
    %62 = tpu.matmul %61, %48, %cst_27 {dimension_numbers = #tpu.dot_dimension_numbers<[1], [0], [0], [1], [0, 0, 1, 1], [], []>} : vector<8x8xf32>, vector<8x32xf32>, vector<8x32xf32> -> vector<8x32xf32>
    %63 = arith.addf %49, %62 : vector<8x32xf32>
    %64 = vector.extract_strided_slice %39 {offsets = [0, 0], sizes = [8, 32], strides = [1, 1]} : vector<8x64xf32> to vector<8x32xf32>
    %cst_28 = arith.constant dense<0.000000e+00> : vector<32x32xf32>
    %65 = tpu.matmul %48, %64, %cst_28 {dimension_numbers = #tpu.dot_dimension_numbers<[0], [0], [1], [1], [0, 1, 1, 1], [], []>} : vector<8x32xf32>, vector<8x32xf32>, vector<32x32xf32> -> vector<32x32xf32>
    %66 = vector.extract_strided_slice %33 {offsets = [0, 0], sizes = [1, 32], strides = [1, 1]} : vector<1x64xf32> to vector<1x32xf32>
    %67 = vector.broadcast %66 : vector<1x32xf32> to vector<32x32xf32>
    %68 = arith.mulf %46, %67 : vector<32x32xf32>
    %69 = arith.addf %68, %65 : vector<32x32xf32>
    %c0_29 = arith.constant 0 : index
    %c0_30 = arith.constant 0 : index
    %c0_31 = arith.constant 0 : index
    %70 = vector.load %arg10[%c0_29, %c0_30, %c0_31] : memref<2x32x32xf32, #tpu.memory_space<vmem>>, vector<1x32x32xf32>
    %71 = vector.shape_cast %70 : vector<1x32x32xf32> to vector<32x32xf32>
    %72 = vector.shape_cast %69 : vector<32x32xf32> to vector<1x32x32xf32>
    tpu.vector_store %arg10[%c0_29, %c0_30, %c0_31], %72 {strides = array<i32>} : memref<2x32x32xf32, #tpu.memory_space<vmem>>, vector<1x32x32xf32>,
    %c1 = arith.constant 1 : index
    %c0_32 = arith.constant 0 : index
    %c0_33 = arith.constant 0 : index
    %73 = vector.load %arg10[%c1, %c0_32, %c0_33] : memref<2x32x32xf32, #tpu.memory_space<vmem>>, vector<1x32x32xf32>
    %74 = vector.shape_cast %73 : vector<1x32x32xf32> to vector<32x32xf32>
    %75 = vector.extract_strided_slice %34 {offsets = [0, 32], sizes = [8, 32], strides = [1, 1]} : vector<8x64xf32> to vector<8x32xf32>
    %76 = vector.extract_strided_slice %11 {offsets = [0, 32], sizes = [8, 32], strides = [1, 1]} : vector<8x64xf32> to vector<8x32xf32>
    %cst_34 = arith.constant dense<0.000000e+00> : vector<8x32xf32>
    %77 = tpu.matmul %75, %74, %cst_34 {dimension_numbers = #tpu.dot_dimension_numbers<[1], [1], [0], [0], [0, 0, 1, 0], [], []>} : vector<8x32xf32>, vector<32x32xf32>, vector<8x32xf32> -> vector<8x32xf32>
    %78 = vector.extract_strided_slice %38 {offsets = [0, 32], sizes = [8, 32], strides = [1, 1]} : vector<8x64xf32> to vector<8x32xf32>
    %cst_35 = arith.constant dense<0.000000e+00> : vector<8x8xf32>
    %79 = tpu.matmul %75, %78, %cst_35 {dimension_numbers = #tpu.dot_dimension_numbers<[1], [1], [0], [0], [0, 0, 1, 0], [], []>} : vector<8x32xf32>, vector<8x32xf32>, vector<8x8xf32> -> vector<8x8xf32>
    %80 = vector.extract_strided_slice %42 {offsets = [0, 32], sizes = [8, 32], strides = [1, 1]} : vector<8x64xf32> to vector<8x32xf32>
    %cst_36 = arith.constant dense<0.000000e+00> : vector<8xf32>
    %81 = vector.multi_reduction <add>, %80, %cst_36 [1] : vector<8x32xf32> to vector<8xf32>
    %82 = vector.shape_cast %81 : vector<8xf32> to vector<8x1xf32>
    %cst_37 = arith.constant 0.000000e+00 : f32
    %83 = vector.broadcast %cst_37 : f32 to vector<8x8xf32>
    %84 = arith.select %43, %79, %83 : vector<8x8xi1>, vector<8x8xf32>
    %cst_38 = arith.constant 0.000000e+00 : f32
    %85 = vector.shape_cast %82 : vector<8x1xf32> to vector<8x1xf32>
    %86 = vector.broadcast %85 : vector<8x1xf32> to vector<8x8xf32>
    %87 = vector.broadcast %cst_38 : f32 to vector<8x8xf32>
    %88 = arith.select %44, %86, %87 : vector<8x8xi1>, vector<8x8xf32>
    %89 = arith.addf %84, %88 : vector<8x8xf32>
    %cst_39 = arith.constant dense<0.000000e+00> : vector<8x32xf32>
    %90 = tpu.matmul %89, %76, %cst_39 {dimension_numbers = #tpu.dot_dimension_numbers<[1], [0], [0], [1], [0, 0, 1, 1], [], []>} : vector<8x8xf32>, vector<8x32xf32>, vector<8x32xf32> -> vector<8x32xf32>
    %91 = arith.addf %77, %90 : vector<8x32xf32>
    %92 = vector.extract_strided_slice %39 {offsets = [0, 32], sizes = [8, 32], strides = [1, 1]} : vector<8x64xf32> to vector<8x32xf32>
    %cst_40 = arith.constant dense<0.000000e+00> : vector<32x32xf32>
    %93 = tpu.matmul %76, %92, %cst_40 {dimension_numbers = #tpu.dot_dimension_numbers<[0], [0], [1], [1], [0, 1, 1, 1], [], []>} : vector<8x32xf32>, vector<8x32xf32>, vector<32x32xf32> -> vector<32x32xf32>
    %94 = vector.extract_strided_slice %33 {offsets = [0, 32], sizes = [1, 32], strides = [1, 1]} : vector<1x64xf32> to vector<1x32xf32>
    %95 = vector.broadcast %94 : vector<1x32xf32> to vector<32x32xf32>
    %96 = arith.mulf %74, %95 : vector<32x32xf32>
    %97 = arith.addf %96, %93 : vector<32x32xf32>
    %c1_41 = arith.constant 1 : index
    %c0_42 = arith.constant 0 : index
    %c0_43 = arith.constant 0 : index
    %98 = vector.load %arg10[%c1_41, %c0_42, %c0_43] : memref<2x32x32xf32, #tpu.memory_space<vmem>>, vector<1x32x32xf32>
    %99 = vector.shape_cast %98 : vector<1x32x32xf32> to vector<32x32xf32>
    %100 = vector.shape_cast %97 : vector<32x32xf32> to vector<1x32x32xf32>
    tpu.vector_store %arg10[%c1_41, %c0_42, %c0_43], %100 {strides = array<i32>} : memref<2x32x32xf32, #tpu.memory_space<vmem>>, vector<1x32x32xf32>,
    %101 = tpu.concatenate %63, %91 in 1 : vector<8x32xf32>, vector<8x32xf32> -> vector<8x64xf32>
    %102 = arith.truncf %101 : vector<8x64xf32> to vector<8x64xbf16>
    %c0_44 = arith.constant 0 : index
    %c0_45 = arith.constant 0 : index
    %c0_46 = arith.constant 0 : index
    %103 = vector.load %arg8[%c0_44, %c0_45, %c0_46] : memref<1x8x64xbf16, #tpu.memory_space<vmem>>, vector<1x8x64xbf16>
    %104 = vector.shape_cast %103 : vector<1x8x64xbf16> to vector<8x64xbf16>
    %105 = vector.shape_cast %102 : vector<8x64xbf16> to vector<1x8x64xbf16>
    tpu.vector_store %arg8[%c0_44, %c0_45, %c0_46], %105 {strides = array<i32>} : memref<1x8x64xbf16, #tpu.memory_space<vmem>>, vector<1x8x64xbf16>,
    %c1_i32 = arith.constant 1 : i32
    %106 = arith.cmpi eq, %arg1, %c1_i32 : i32
    %107 = arith.extui %106 : i1 to i32
    %c0_i32_47 = arith.constant 0 : i32
    %108 = arith.cmpi ne, %107, %c0_i32_47 : i32
    scf.if %108 {
      %c0_48 = arith.constant 0 : index
      %c0_49 = arith.constant 0 : index
      %c0_50 = arith.constant 0 : index
      %109 = vector.load %arg10[%c0_48, %c0_49, %c0_50] : memref<2x32x32xf32, #tpu.memory_space<vmem>>, vector<2x32x32xf32>
      %110 = arith.truncf %109 : vector<2x32x32xf32> to vector<2x32x32xbf16>
      %c0_51 = arith.constant 0 : index
      %c0_52 = arith.constant 0 : index
      %c0_53 = arith.constant 0 : index
      %c0_54 = arith.constant 0 : index
      %111 = vector.load %arg9[%c0_51, %c0_52, %c0_53, %c0_54] : memref<1x2x32x32xbf16, #tpu.memory_space<vmem>>, vector<1x2x32x32xbf16>
      %112 = vector.shape_cast %111 : vector<1x2x32x32xbf16> to vector<2x32x32xbf16>
      %113 = vector.shape_cast %110 : vector<2x32x32xbf16> to vector<1x2x32x32xbf16>
      tpu.vector_store %arg9[%c0_51, %c0_52, %c0_53, %c0_54], %113 {strides = array<i32>} : memref<1x2x32x32xbf16, #tpu.memory_space<vmem>>, vector<1x2x32x32xbf16>,
    } else {
    }
    return
  }
  func.func @transform_0(%arg0: i32, %arg1: i32) -> (i32, i32, i32, i32) {
    %c0_i32 = arith.constant 0 : i32
    %c0_i32_0 = arith.constant 0 : i32
    %c0_i32_1 = arith.constant 0 : i32
    return %c0_i32, %arg0, %arg1, %c0_i32_0 : i32, i32, i32, i32
  }
  func.func @transform_1(%arg0: i32, %arg1: i32) -> (i32, i32, i32, i32) {
    %c1_i32 = arith.constant 1 : i32
    %c0_i32 = arith.constant 0 : i32
    %c0_i32_0 = arith.constant 0 : i32
    return %c1_i32, %arg0, %arg1, %c0_i32 : i32, i32, i32, i32
  }
  func.func @transform_2(%arg0: i32, %arg1: i32) -> (i32, i32, i32, i32) {
    %c2_i32 = arith.constant 2 : i32
    %c0_i32 = arith.constant 0 : i32
    %c0_i32_0 = arith.constant 0 : i32
    return %c2_i32, %arg0, %arg1, %c0_i32 : i32, i32, i32, i32
  }
  func.func @transform_3(%arg0: i32, %arg1: i32) -> (i32, i32, i32) {
    %c0_i32 = arith.constant 0 : i32
    %c0_i32_0 = arith.constant 0 : i32
    return %arg0, %arg1, %c0_i32 : i32, i32, i32
  }
  func.func @transform_4(%arg0: i32, %arg1: i32) -> (i32, i32) {
    %c0_i32 = arith.constant 0 : i32
    %c0_i32_0 = arith.constant 0 : i32
    %c0_i32_1 = arith.constant 0 : i32
    return %c0_i32, %c0_i32_0 : i32, i32
  }
  func.func @transform_5(%arg0: i32, %arg1: i32) -> (i32, i32, i32) {
    %c0_i32 = arith.constant 0 : i32
    %c0_i32_0 = arith.constant 0 : i32
    %c0_i32_1 = arith.constant 0 : i32
    %c0_i32_2 = arith.constant 0 : i32
    return %c0_i32, %c0_i32_0, %c0_i32_1 : i32, i32, i32
  }
  func.func @transform_6(%arg0: i32, %arg1: i32) -> (i32, i32, i32) {
    %c0_i32 = arith.constant 0 : i32
    %c0_i32_0 = arith.constant 0 : i32
    return %arg0, %arg1, %c0_i32 : i32, i32, i32
  }
  func.func @transform_7(%arg0: i32, %arg1: i32) -> (i32, i32, i32, i32) {
    %c0_i32 = arith.constant 0 : i32
    %c0_i32_0 = arith.constant 0 : i32
    %c0_i32_1 = arith.constant 0 : i32
    %c0_i32_2 = arith.constant 0 : i32
    return %arg0, %c0_i32, %c0_i32_0, %c0_i32_1 : i32, i32, i32, i32
  }
}

</mosaic_0001>

<bundles_post_ra>
// kernel: wkv6_forward.1
= control target key start
LH: loop header
LB: loop body
LE: loop exit
PB: predicated region body
PF: predicated region fallthrough
CT: control target
= control target key end

     0   :  { %s2868_s0 = inlined_call_operand.hbm [shape: bf16[3,2,16,64], index: 0, kind: input, shape index: {}, may-alias: {0,1,2}]   ;;  %s2869_s1 = inlined_call_operand.hbm [shape: bf16[3,2,16,64], index: 1, kind: input, shape index: {}, may-alias: {0,1,2}]   ;;  %s2870_s2 = inlined_call_operand.hbm [shape: bf16[3,2,16,64], index: 2, kind: input, shape index: {}, may-alias: {0,1,2}]   ;;  %s2871_s3 = inlined_call_operand.hbm [shape: bf16[2,16,64], index: 3, kind: input, shape index: {}]   ;;  %s2872_s4 = inlined_call_operand.vmem [shape: bf16[1,64], index: 4, kind: input, shape index: {}]   ;;  %s2873_s5 = inlined_call_operand.hbm [shape: f32[2,32,32], index: 5, kind: input, shape index: {}]   ;;  %s2874_s6 = inlined_call_operand.hbm [shape: bf16[2,16,64], index: 6, kind: output, shape index: {0}]   ;;  %s2875_s7 = inlined_call_operand.hbm [shape: bf16[2,2,32,32], index: 7, kind: output, shape index: {1}]  }
   0x1   :  { %2894 = sst [smem:[#allocation33_spill]] %s2869_s1 }
   0x2   :  { %2895 = sst [smem:[#allocation34_spill]] %s2873_s5 }
   0x3   :  { %2896 = sst [smem:[#allocation35_spill]] %s2874_s6 }
   0x4   :  { %2897 = sst [smem:[#allocation36_spill]] %s2875_s7 }
   0x5   :  { %13 = vsyncpa [#allocation4], 0 }
   0x6   :  { %15 = vsyncpa [#allocation4 + $0x1], 0 }
   0x7   :  { %16 = vsyncpa [#allocation7], 0 }
   0x8   :  { %18 = vsyncpa [#allocation7 + $0x1], 0 }
   0x9   :  { %19 = vsyncpa [#allocation10], 0 }
   0xa   :  { %21 = vsyncpa [#allocation10 + $0x1], 0 }
   0xb   :  { %22 = vsyncpa [#allocation5], 0 }
   0xc   :  { %24 = vsyncpa [#allocation5 + $0x1], 0 }
   0xd   :  { %25 = vsyncpa [#allocation14], 0 }
   0xe   :  { %27 = vsyncpa [#allocation14 + $0x1], 0  ;;  %s2367_s24 = smov 0   ;;  %s2369_s25 = smov 0  }
   0xf   :  { %s2371_s26 = smov 0   ;;  %s2373_s27 = smov 0  }
  0x10   :  { %s2375_s28 = smov 0   ;;  %s2377_s29 = smov 0  }
  0x11   :  { %s2379_s30 = smov 0   ;;  %s2381_s8 = smov 0  }
  0x12   :  { %s2383_s9 = smov 0   ;;  %s2385_s10 = smov 0  }
  0x13   :  { %s2387_s11 = smov 0  }
  0x14 LB: > { %2898 = sst [smem:[#allocation21_spill]] %s2270_s24  ;;  %s2423_s12 = sadd.s32 4294967295, %s2310_s11   ;;  %s2310_s11 = sphi %s2387_s11, %s33_s11   ;;  %s2306_s10 = sphi %s2385_s10, %s2939_s10   ;;  %s2302_s9 = sphi %s2383_s9, %s2938_s9   ;;  %s2298_s8 = sphi %s2381_s8, %s2937_s8   ;;  %s2294_s30 = sphi %s2379_s30, %s2936_s30   ;;  %s2290_s29 = sphi %s2377_s29, %s2945_s29   ;;  %s2286_s28 = sphi %s2375_s28, %s2944_s28   ;;  %s2282_s27 = sphi %s2373_s27, %s2943_s27   ;;  %s2278_s26 = sphi %s2371_s26, %s2942_s26   ;;  %s2274_s25 = sphi %s2369_s25, %s2941_s25   ;;  %s2270_s24 = sphi %s2367_s24, %s2940_s24  }
  0x15   : > { %2899 = sst [smem:[#allocation22_spill]] %s2282_s27  ;;  %s1687_s13 = sadd.s32 4294967294, %s2310_s11  }
  0x16   : > { %2900 = sst [smem:[#allocation23_spill]] %s2302_s9  ;;  %p67_p0 = scmp.ne.s32.totalorder %s2286_s28, %s2282_s27 }
  0x17   : > { %2901 = sst [smem:[#allocation24_spill]] %s2306_s10  ;;  %p68_p1 = scmp.eq.s32.totalorder %s2423_s12, 0 }
  0x18   : > { %p2876_p2 = scmp.eq.s32.totalorder %s2423_s12, 3  ;;  %p225_p3 = scmp.eq.s32.totalorder %s1687_s13, 3 }
  0x19   : > { %p2432_p4 = por %p68_p1, %p67_p0  ;;  %p244_p5 = scmp.ne.s32.totalorder %s2278_s26, %s2274_s25 }
  0x1a   : > { %p2438_p6 = por %p225_p3, %p67_p0  ;;  %p250_p7 = scmp.ne.s32.totalorder %s2274_s25, %s2270_s24 }
  0x1b   : > { %p2446_p8 = por %p244_p5, %p2876_p2  ;;  %p1688_p9 = scmp.ge.s32.totalorder %s2310_s11, 1 }
  0x1c   : > { %s2903_s15 = scalar_select %p2438_p6, 1, 0 }
  0x1d   : > { %s2905_s16 = scalar_select %p2446_p8, 1, 0 }
  0x1e   : > { %2904 = sst [smem:[#allocation25_spill]] %s2903_s15  ;;  %p2451_p10 = por %p250_p7, %p225_p3 }
  0x1f   : > { %2906 = sst [smem:[#allocation26_spill]] %s2905_s16  ;;  %p258_p11 = scmp.lt.s32.totalorder %s2310_s11, 5 }
  0x20   : > { %s2907_s17 = scalar_select %p2451_p10, 1, 0 }
  0x21   : > { %p2456_p12 = pnand %p1688_p9, %p258_p11  ;;  %s2312_s19 = smov [#allocation11]  }
  0x22   : > { %2908 = sst [smem:[#allocation27_spill]] %s2907_s17  ;;  %s273_s20 = sshll.u32 %s2312_s19, 4  ;;  %s274_s20 = int_to_ptr.vmem [resolvable:$true] %s273_s20 }
  0x23   : > { %p1873_p13 = pneg %p2456_p12  ;;  %s2019_s21 = scalar_lea.vmem %s274_s20, 1024 }
  0x24   : > { %p2020_p2 = scmp.ne.s32.totalorder %s274_s20, %s2019_s21  ;;  %p2027_p6 = scmp.lt.s32.totalorder %s274_s20, %s274_s20 }
  0x25   : > { %p1874_p0 = pnand %p1873_p13, %p68_p1  ;;  %p2028_p10 = scmp.lt.s32.totalorder %s2019_s21, %s2019_s21 }
  0x27   : > { %p2010_p5 = pneg %p1874_p0  ;;  %p2029_p8 = por %p2028_p10, %p2027_p6 }
  0x29   : > { %p2022_p3 = pnand %p2020_p2, %p2010_p5 }
  0x2b   : > { %p2023_p7 = pneg %p2022_p3 }
  0x2d   : > { %p2030_p9 = pnand %p2029_p8, %p2023_p7 }
  0x2f   : > { %2033 = shalt.err (!%p2030_p9)
}
  0x30   : > { %s2313_s22 = smov 128   ;;  %s2314_s23 = smov 8  }
  0x31   : > { %s2910_s5 = sld [smem:[#allocation34_spill]]  ;;  %s42_s21 = sadd.s32 1, %s2302_s9 }
  0x32   : > { %p43_p2 = scmp.ge.s32.totalorder %s42_s21, 2  ;;  %s45_s17 = sadd.s32 1, %s2306_s10 }
  0x33   : > { %s54_s24 = sadd.s32 1, %s2290_s29  ;;  %p61_p6 = scmp.ne.s32.totalorder %s2290_s29, %s2286_s28 }
  0x34   : > { %s2947_s21 = smov (%p43_p2, %s42_s21), 0  ;;  %s2949_s17 = smov (!%p43_p2, %s45_s17), %s2306_s10 }
  0x35   : > { %2911 = sst [smem:[#allocation28_spill]] %s2947_s21  ;;  %s50_s15 = ssub.s32 %s2302_s9, %s2947_s21 }
  0x36   : > { %p62_p8 = scmp.eq.s32.totalorder %s2310_s11, 0  ;;  %p47_p10 = scmp.ge.s32.totalorder %s2949_s17, 2 }
  0x37   : > { %1876 = dma.hbm_to_vmem [thread:$0]  (!%p1874_p0), %s2910_s5, 1024, %s274_s20, [#allocation10], %s2313_s22, %s2313_s22, %s2314_s23  }
  0x38   : > { %p2912_p11 = scmp.eq.s32.totalorder %s2423_s12, 3  ;;  %p2484_p0 = por %p62_p8, %p61_p6 }
  0x39   : > { %s234_s23 = sadd.s32 1, %s2278_s26  ;;  %s2951_s17 = smov (%p47_p10, %s2949_s17), 0 }
  0x3a   : > { %p2480_p13 = por %p2912_p11, %p61_p6  ;;  %2916 = sst [smem:[#allocation30_spill]] %s2951_s17 }
  0x3b   : > { %p1898_p5 = scmp.lt.s32.totalorder %s2310_s11, 4  ;;  %s2889_s13 = sand.u32 1, %s2290_s29  }
  0x3c   : > { %s2913_s20 = scalar_select %p2480_p13, 1, 0 }
  0x3d   : > { %s49_s19 = ssub.s32 %s2306_s10, %s2951_s17  ;;  %s2497_s5 = sshll.u32 %s2889_s13, 2 }
  0x3e   : > { %2914 = sst [smem:[#allocation29_spill]] %s2913_s20  ;;  %s51_s21 = sor.u32 %s50_s15, %s49_s19 }
  0x3f   : > { %p232_p3 = scmp.eq.s32.totalorder %s49_s19, 0  ;;  %p52_p7 = scmp.eq.s32.totalorder %s51_s21, 0 }
  0x40   : > { %s1692_s27 = sshll.u32 %s2306_s10, 1  ;;  %p2509_p9 = pnand %p1898_p5, %p2484_p0 }
  0x41   : > { %s2501_s7 = scalar_select %p232_p3, %s2278_s26, %s234_s23  }
  0x42   : > { %s2504_s16 = scalar_select %p52_p7, %s2290_s29, %s54_s24  }
  0x43   : > { %2917 = sst [smem:[#allocation31_spill]] %s2501_s7  ;;  %s296_s6 = sadd.s32 %s2302_s9, %s1692_s27 }
  0x44   : > { %2918 = sst [smem:[#allocation32_spill]] %s2504_s16  ;;  %s2513_s13 = sshll.u32 %s296_s6, 6 }
  0x45   : > { %s2893_s17 = sand.u32 1, %s2310_s11   ;;  %s2920_s1 = sld [smem:[#allocation33_spill]] }
  0x46   : > { %s311_s10 = scalar_lea.vmem [#allocation6], %s2497_s5  ;;  %s2523_s27 = scalar_lea.sflag [#allocation7], %s2893_s17 }
  0x47   : > { %s321_s24 = sshll.u32 %s311_s10, 4  ;;  %p2036_p2 = pneg %p2509_p9  ;;  %s322_s24 = int_to_ptr.vmem [resolvable:$true] %s321_s24 }
  0x48   : > { %s2047_s22 = scalar_lea.vmem %s322_s24, 64  ;;  %s2315_s6 = smov [#allocation6]  }
  0x49   : > { %p2048_p6 = scmp.ne.s32.totalorder %s322_s24, %s2047_s22  ;;  %s2052_s9 = sshll.u32 %s2315_s6, 4  ;;  %s2053_s9 = int_to_ptr.vmem [resolvable:$false] %s2052_s9 }
  0x4a   : > { %s2054_s15 = scalar_lea.vmem %s2053_s9, 128  ;;  %p2055_p11 = scmp.lt.s32.totalorder %s322_s24, %s2053_s9 }
  0x4b   : > { %s1541_s21 = scalar_lea.hbm %s2920_s1, %s2513_s13  ;;  %p2050_p8 = pnand %p2048_p6, %p2036_p2 }
  0x4c   : > { %s1542_s23 = scalar_lea.hbm %s1541_s21, 256  ;;  %p2056_p0 = scmp.lt.s32.totalorder %s2054_s15, %s2047_s22 }
  0x4d   : > { %p2051_p10 = pneg %p2050_p8 }
  0x4e   : > { %p2057_p5 = por %p2056_p0, %p2055_p11 }
  0x50   : > { %p2058_p3 = pnand %p2057_p5, %p2051_p10 }
  0x52   : > { %2061 = shalt.err (!%p2058_p3)
}
  0x53   : > { %1883 = dma.hbm_to_vmem [thread:$0]  (!%p2509_p9), %s1542_s23, 64, %s322_s24, %s2523_s27  }
  0x54   : > { %s298_s21 = scalar_lea.hbm %s2868_s0, %s2513_s13  ;;  %s291_s6 = scalar_lea.vmem [#allocation3], %s2497_s5 }
  0x55   : > { %s300_s17 = sshll.u32 %s291_s6, 4  ;;  %s2921_s9 = sand.u32 1, %s2290_s29   ;;  %s301_s17 = int_to_ptr.vmem [resolvable:$true] %s300_s17 }
  0x56   : > { %s288_s22 = scalar_lea.sflag [#allocation4], %s2921_s9  ;;  %s2076_s15 = scalar_lea.vmem %s301_s17, 64 }
  0x57   : > { %p2077_p7 = scmp.ne.s32.totalorder %s301_s17, %s2076_s15  ;;  %s2316_s1 = smov [#allocation3]  }
  0x58   : > { %s2081_s16 = sshll.u32 %s2316_s1, 4  ;;  %s2082_s16 = int_to_ptr.vmem [resolvable:$false] %s2081_s16 }
  0x59   : > { %p2079_p6 = pnand %p2077_p7, %p2036_p2  ;;  %s2083_s7 = scalar_lea.vmem %s2082_s16, 128 }
  0x5a   : > { %p2084_p10 = scmp.lt.s32.totalorder %s301_s17, %s2082_s16  ;;  %p2085_p11 = scmp.lt.s32.totalorder %s2083_s7, %s2076_s15 }
  0x5b   : > { %p2080_p8 = pneg %p2079_p6 }
  0x5c   : > { %p2086_p0 = por %p2085_p11, %p2084_p10 }
  0x5e   : > { %p2087_p5 = pnand %p2086_p0, %p2080_p8 }
  0x60   : > { %2090 = shalt.err (!%p2087_p5)
}
  0x61   : > { %1880 = dma.hbm_to_vmem [thread:$0]  (!%p2509_p9), %s298_s21, 64, %s301_s17, %s288_s22  }
  0x62   : > { %s1549_s10 = scalar_lea.hbm %s2870_s2, %s2513_s13  ;;  %s332_s19 = scalar_lea.vmem [#allocation8], %s2497_s5 }
  0x63   : > { %s342_s6 = sshll.u32 %s332_s19, 4  ;;  %s1550_s1 = scalar_lea.hbm %s1549_s10, 512  ;;  %s343_s6 = int_to_ptr.vmem [resolvable:$true] %s342_s6 }
  0x64   : > { %s2104_s9 = scalar_lea.vmem %s343_s6, 64  ;;  %s2317_s7 = smov [#allocation8]  }
  0x65   : > { %p2105_p3 = scmp.ne.s32.totalorder %s343_s6, %s2104_s9  ;;  %s2109_s16 = sshll.u32 %s2317_s7, 4  ;;  %s2110_s16 = int_to_ptr.vmem [resolvable:$false] %s2109_s16 }
  0x66   : > { %s2111_s15 = scalar_lea.vmem %s2110_s16, 128  ;;  %p2112_p8 = scmp.lt.s32.totalorder %s343_s6, %s2110_s16 }
  0x67   : > { %p2107_p7 = pnand %p2105_p3, %p2036_p2  ;;  %p2113_p10 = scmp.lt.s32.totalorder %s2111_s15, %s2104_s9 }
  0x69   : > { %p2108_p6 = pneg %p2107_p7  ;;  %p2114_p11 = por %p2113_p10, %p2112_p8 }
  0x6b   : > { %p2115_p0 = pnand %p2114_p11, %p2108_p6 }
  0x6d   : > { %2118 = shalt.err (!%p2115_p0)
}
  0x6e   : > { %1886 = dma.hbm_to_vmem [thread:$0]  (!%p2509_p9), %s1550_s1, 64, %s343_s6, %s2523_s27  }
  0x6f   : > { %s360_s22 = scalar_lea.hbm %s2871_s3, %s2513_s13  ;;  %s353_s23 = scalar_lea.vmem [#allocation9], %s2497_s5 }
  0x70   : > { %s362_s24 = sshll.u32 %s353_s23, 4  ;;  %s2922_s10 = sand.u32 1, %s2310_s11   ;;  %s363_s24 = int_to_ptr.vmem [resolvable:$true] %s362_s24 }
  0x71   : > { %s350_s19 = scalar_lea.sflag [#allocation10], %s2922_s10  ;;  %s2133_s9 = scalar_lea.vmem %s363_s24, 64 }
  0x72   : > { %p2134_p5 = scmp.ne.s32.totalorder %s363_s24, %s2133_s9  ;;  %s2318_s7 = smov [#allocation9]  }
  0x73   : > { %s2138_s16 = sshll.u32 %s2318_s7, 4  ;;  %s2139_s16 = int_to_ptr.vmem [resolvable:$false] %s2138_s16 }
  0x74   : > { %p2136_p3 = pnand %p2134_p5, %p2036_p2  ;;  %s2140_s15 = scalar_lea.vmem %s2139_s16, 128 }
  0x75   : > { %p2141_p6 = scmp.lt.s32.totalorder %s363_s24, %s2139_s16  ;;  %p2142_p8 = scmp.lt.s32.totalorder %s2140_s15, %s2133_s9 }
  0x76   : > { %p2137_p7 = pneg %p2136_p3 }
  0x77   : > { %p2143_p10 = por %p2142_p8, %p2141_p6 }
  0x79   : > { %p2144_p11 = pnand %p2143_p10, %p2137_p7 }
  0x7b   : > { %2147 = shalt.err (!%p2144_p11)
}
  0x7c   : > { %1889 = dma.hbm_to_vmem [thread:$0]  (!%p2509_p9), %s360_s22, 64, %s363_s24, %s350_s19  }
  0x7d   : > { %371 = sbr.rel (%p2456_p12) target bundleno = 1166 (0x48e), region = 44  ;;  %s2571_s5 = sand.u32 (!%p2456_p12), 1, %s2286_s28  }
  0x7e   : > { %s2574_s13 = sshll.u32 (!%p2456_p12), %s2571_s5, 2  ;;  %s374_s27 = scalar_lea.sflag (!%p2456_p12), [#allocation4], %s2571_s5 }
  0x7f   : > { %s377_s6 = scalar_lea.vmem (!%p2456_p12), [#allocation3], %s2574_s13 }
  0x82   : > { %2245 = dma.done.wait (%p2432_p4), %s374_s27, 64  }
  0x83   : > { %2247 = vsyncadd (%p2432_p4), %s374_s27, 4294967232  ;;  %s382_s18 = sand.u32 1, %s2423_s12   ;;  %s386_s1 = scalar_lea.vmem [#allocation6], %s2574_s13 }
  0x84   : > { %s383_s20 = scalar_lea.sflag [#allocation7], %s382_s18 }
  0x85   : > { %2249 = dma.done.wait (%p2432_p4), %s383_s20, 128  }
  0x86   : > { %2251 = vsyncadd (%p2432_p4), %s383_s20, 4294967168  ;;  %s395_s17 = scalar_lea.vmem [#allocation8], %s2574_s13  ;;  %s401_s21 = scalar_lea.sflag [#allocation10], %s382_s18 }
  0x87   : > { %s404_s22 = scalar_lea.vmem [#allocation9], %s2574_s13 }
  0x88   : > { %2253 = dma.done.wait (%p2432_p4), %s401_s21, 64  }
  0x89   : > { %2255 = vsyncadd (%p2432_p4), %s401_s21, 4294967232 }
  0x8a   : > { %2257 = dma.done.wait (%p68_p1), [#allocation10], 1024  }
  0x8b   : > { %2259 = vsyncadd (%p68_p1), [#allocation10], 4294966272  ;;  %s456_s23 = sand.u32 1, %s2274_s25   ;;  %s451_s10 = scalar_lea.vmem [#allocation12], %s2574_s13 }
  0x8c   : > { %s1710_s24 = sshll.u32 %s456_s23, 5  ;;  %p1711_p12 = scmp.ne.s32.totalorder %s2294_s30, 0 }
  0x8d   : > { %s2602_s19 = scalar_lea.vmem [#allocation13], %s1710_s24 }
  0x8e   : > { %462 = sbr.rel (%p1711_p12) target bundleno = 152 (0x98), region = 68 }
  0x93   : > { %v463_v0 = vld [vmem:[#allocation11] sm:$0xff]  ;;  %vm471_vm0 = vcmask 261120   ;;  %v464_v1 = vld [vmem:[#allocation11 + $0x8] sm:$0xff]  ;;  %v465_v2 = vld [vmem:[#allocation11 + $0x10] sm:$0xff] }
  0x94   : > { %472 = vst.msk [vmem:[#allocation2] sm:$0xff] %vm471_vm0, %v463_v0  ;;  %473 = vst.msk [vmem:[#allocation2 + $0x8] sm:$0xff] %vm471_vm0, %v464_v1  ;;  %v466_v3 = vld [vmem:[#allocation11 + $0x18] sm:$0xff]  ;;  %v467_v4 = vld [vmem:[#allocation11 + $0x20] sm:$0xff] }
  0x95   : > { %474 = vst.msk [vmem:[#allocation2 + $0x10] sm:$0xff] %vm471_vm0, %v465_v2  ;;  %v468_v5 = vld [vmem:[#allocation11 + $0x28] sm:$0xff]  ;;  %475 = vst.msk [vmem:[#allocation2 + $0x18] sm:$0xff] %vm471_vm0, %v466_v3  ;;  %v469_v6 = vld [vmem:[#allocation11 + $0x30] sm:$0xff] }
  0x96   : > { %476 = vst.msk [vmem:[#allocation2 + $0x20] sm:$0xff] %vm471_vm0, %v467_v4  ;;  %477 = vst.msk [vmem:[#allocation2 + $0x28] sm:$0xff] %vm471_vm0, %v468_v5  ;;  %v470_v7 = vld [vmem:[#allocation11 + $0x38] sm:$0xff] }
  0x97   : > { %478 = vst.msk [vmem:[#allocation2 + $0x30] sm:$0xff] %vm471_vm0, %v469_v6  ;;  %479 = vst.msk [vmem:[#allocation2 + $0x38] sm:$0xff] %vm471_vm0, %v470_v7 }
  0x98 PF: > { %v486_v8 = vld [vmem:[%s404_s22] sm:$0xf]  ;;  %v493_v9 = vlaneseq  ;;  %v2319_v10 = vmov 0.0   ;;  %vm2320_vm1 = vmmov 0   ;;  %v480_v12 = vld [vmem:[%s377_s6] sm:$0xf] }
  0x99   : > { %1794 = vmatprep.subr.mxu0 %v2319_v10  ;;  %v487_v11 = vunpack.c.l.bf16 %v486_v8  ;;  %1796 = vmatprep.mubr.msk.f32.mxu0 %vm2320_vm1, %v2319_v10  ;;  %v488_v13 = vld [vmem:[%s2872_s4] sm:$0x1]  ;;  %v482_v16 = vld [vmem:[%s386_s1] sm:$0xf]  ;;  %v481_v18 = vunpack.c.l.bf16 %v480_v12  ;;  %vm604_vm2 = vcmask 261120   ;;  %vm500_vm4 = vcmask 64512  }
  0x9a   : > { %v2613_v14 = vshrl.u32 %v493_v9, 7  ;;  %1809 = vmatprep.subr.mxu1 %v2319_v10  ;;  %1817 = vmatprep.mubr.msk.f32.mxu1 %vm2320_vm1, %v2319_v10  ;;  %v489_v17 = vunpack.c.l.bf16 %v488_v13  ;;  %v2621_v20 = vunpack.c.l.bf16 %v482_v16  ;;  %v2624_v24 = vand.u32 127, %v493_v9  ;;  %v484_v49 = vld [vmem:[%s395_s17] sm:$0xf]  ;;  %s2321_s9 = smov 96   ;;  %s2322_s7 = smov 32  }
  0x9b   : > { %v490_v15 = vmul.f32 1.442695, %v487_v11  ;;  %v2644_v31 = vld [vmem:[#allocation2 + $0x8] sm:$0xff]  ;;  %v2649_v32 = vld [vmem:[#allocation2] sm:$0xff]  ;;  %v485_v53 = vunpack.c.l.bf16 %v484_v49  ;;  %vm1394_vm7 = vcmask 519168   ;;  %p1738_p1 = scmp.ne.s32.totalorder %s2294_s30, 1 }
  0x9c   : > { %v594_v19 = vsub.s32 0, %v2613_v14  ;;  %vm497_vm3 = vcmp.ge.s32.totalorder %v2613_v14, %v2624_v24  ;;  %v2634_v29 = vld [vmem:[#allocation2 + $0x18] sm:$0xff]  ;;  %v2639_v30 = vld [vmem:[#allocation2 + $0x10] sm:$0xff]  ;;  %v579_v33 = vsub.s32 7, %v2613_v14  ;;  %vm599_vm5 = vcmp.eq.s32.totalorder %v2613_v14, %v2624_v24 }
  0x9d   : > { %1998 = vpow2.f32 %v490_v15  ;;  %v1712_v28 = vsel %vm497_vm3, 1.0, %v2319_v10  ;;  %1810 = vmatpush3.xpose.msk.msra.mxu1 %vm604_vm2, %v2634_v29  ;;  %v2680_v56 = vld [vmem:[#allocation2 + $0x28] sm:$0xff]  ;;  %v2687_v57 = vld [vmem:[#allocation2 + $0x20] sm:$0xff]  ;;  %vm598_vm6 = vcmp.gt.s32.totalorder %v2613_v14, %v2624_v24 }
  0x9e   : > { %v595_v21 = vrot.slane %v489_v17, %v594_v19  ;;  %1811 = vmatprep.subr.mxu1 %v2319_v10  ;;  %v2660_v51 = vld [vmem:[#allocation2 + $0x38] sm:$0xff]  ;;  %v2670_v54 = vld [vmem:[#allocation2 + $0x30] sm:$0xff] }
  0xa0   : > { %v596_v22 = vmul.f32 %v595_v21, %v481_v18 }
  0xa1   : > { %1812 = vmatpush3.xpose.msk.msra.mxu1 %vm604_vm2, %v2639_v30 }
  0xa2   : > { %v597_v23 = vmul.f32 %v596_v22, %v2621_v20  ;;  %1813 = vmatprep.subr.mxu1 %v2319_v10 }
  0xa4   : > { %v681_v25 = vsel %vm604_vm2, %v597_v23, 0.0 }
  0xa5   : > { %682 = vadd.xlane.f32.xlu0 %v681_v25  ;;  %1814 = vmatpush3.xpose.msk.msra.mxu1 %vm604_vm2, %v2644_v31 }
  0xa6   : > { %1815 = vmatprep.subr.mxu1 %v2319_v10 }
  0xa9   : > { %1816 = vmatpush3.xpose.msk.msra.mxu1 %vm604_vm2, %v2649_v32 }
  0xaa   : > { %v1999_v26 = vpop.eup %1998  ;;  %1838 = vmatprep.subr.mxu1 %v2319_v10 }
  0xab   : > { %v492_v27 = vsub.f32 0.0, %v1999_v26 }
  0xad   : > { %1795 = vmatpush3.msra.mxu0 %v492_v27 }
  0xae   : > { %1797 = vmatmul.mubr.msk.f32.vlgmr.msra.gmra.mxu0 %vm500_vm4, %v1712_v28  ;;  %1799 = vmatprep.subr.mxu0 %v2319_v10 }
  0xaf   : > { %1801 = vmatprep.mubr.msk.f32.mxu0 %vm2320_vm1, %v2319_v10 }
 0x12e   : > { %v683_v58 = vpop.xlane.xlu0 %682 }
 0x12f   : > { %v685_v5 = vsel %vm599_vm5, %v683_v58, 0.0 }
 0x16e   : > { %v570_v34 = vpop.f32.mrf.mxu0 }
 0x16f   : > { %v574_v35 = vsub.f32 %v570_v34, %v492_v27  ;;  %v580_v36 = vrot.slane %v570_v34, %v579_v33  ;;  %v584_v37 = vmul.f32 1.442695, %v570_v34  ;;  %v587_v38 = vsub.f32 0.0, %v570_v34 }
 0x170   : > { %v1798_v39 = vpop.f32.mrf.mxu0 }
 0x171   : > { %v575_v40 = vmul.f32 1.442695, %v574_v35  ;;  %v581_v41 = vsub.f32 %v580_v36, %v570_v34  ;;  %2000 = vpow2.f32 %v584_v37  ;;  %v588_v42 = vmul.f32 1.442695, %v587_v38 }
 0x173   : > { %2002 = vpow2.f32 %v575_v40  ;;  %v582_v43 = vmul.f32 1.442695, %v581_v41 }
 0x174   : > { %2004 = vpow2.f32 %v588_v42 }
 0x175   : > { %2006 = vpow2.f32 %v582_v43 }
 0x17e   : > { %v2001_v44 = vpop.eup %2000 }
 0x17f   : > { %v2655_v45 = vrot.slane %v2001_v44, %v579_v33 }
 0x180   : > { %v2003_v46 = vpop.eup %2002 }
 0x181   : > { %v2005_v47 = vpop.eup %2004  ;;  %v586_v48 = vmul.f32 %v2003_v46, %v481_v18  ;;  %v976_v19 = vmul.f32 %v2655_v45, %v2644_v31  ;;  %v978_v26 = vmul.f32 %v2655_v45, %v2634_v29  ;;  %v977_v31 = vmul.f32 %v2655_v45, %v2639_v30 }
 0x182   : > { %v590_v50 = vmul.f32 %v2005_v47, %v2621_v20  ;;  %v2007_v52 = vpop.eup %2006 }
 0x183   : > { %992 = vrot.lane.b32.xlu1 %v586_v48, %s2321_s9  ;;  %1818 = vmatmul.mubr.msk.f32.vlgmr.msra.gmra.mxu1 %vm604_vm2, %v586_v48  ;;  %v591_v55 = vmul.f32 %v2007_v52, %v2621_v20 }
 0x184   : > { %1800 = vmatpush3.xpose.msk.msra.mxu0 %vm604_vm2, %v590_v50  ;;  %994 = vrot.lane.b32.xlu0 %v590_v50, %s2321_s9 }
 0x185   : > { %1804 = vmatprep.subr.mxu0 %v2319_v10  ;;  %1839 = vmatpush3.xpose.msk.msra.mxu1 %vm604_vm2, %v2660_v51 }
 0x186   : > { %1840 = vmatprep.subr.mxu1 %v2319_v10  ;;  %1846 = vmatprep.mubr.msk.f32.mxu1 %vm2320_vm1, %v2319_v10 }
 0x187   : > { %1802 = vmatmul.mubr.msk.f32.vlgmr.msra.gmra.mxu0 %vm604_vm2, %v586_v48 }
 0x188   : > { %1071 = vrot.lane.b32.xlu0 %v597_v23, %s2321_s9  ;;  %1805 = vmatpush3.msra.mxu0 %v485_v53  ;;  %v975_v23 = vmul.f32 %v2655_v45, %v2649_v32 }
 0x189   : > { %1820 = vmatprep.subr.mxu0 %v591_v55  ;;  %1841 = vmatpush3.xpose.msk.msra.mxu1 %vm604_vm2, %v2670_v54 }
 0x18a   : > { %1842 = vmatprep.subr.mxu1 %v2319_v10  ;;  %1806 = vmatprep.mubr.msk.f32.mxu0 %vm2320_vm1, %v2319_v10 }
 0x18d   : > { %1843 = vmatpush3.xpose.msk.msra.mxu1 %vm604_vm2, %v2680_v56 }
 0x18e   : > { %1844 = vmatprep.subr.mxu1 %v2319_v10 }
 0x191   : > { %1845 = vmatpush3.xpose.msk.msra.mxu1 %vm604_vm2, %v2687_v57 }
 0x1ac   : > { %842 = vxpose.xlu1.b32.start.end [1/1] (short) (narrow) %v485_v53, 32 }
 0x1d6   : > { %1081 = vrot.lane.b32.xlu1 %v485_v53, %s2321_s9 }
 0x1da   : > { %1373 = vrot.lane.b32.xlu1 %v2655_v45, %s2321_s9 }
 0x1f5   : > { %v993_v59 = vpop.permute.xlu1 %992 }
 0x1f6   : > { %v995_v60 = vpop.permute.xlu0 %994  ;;  %1847 = vmatmul.mubr.msk.f32.vlgmr.msra.gmra.mxu1 %vm604_vm2, %v993_v59 }
 0x1fa   : > { %v1072_v61 = vpop.permute.xlu0 %1071 }
 0x1fb   : > { %v1074_v62 = vsel %vm604_vm2, %v1072_v61, 0.0 }
 0x1fc   : > { %1075 = vadd.xlane.f32.xlu0 %v1074_v62 }
 0x212   : > { %1272 = vrot.lane.b32.xlu0 %v591_v55, %s2321_s9 }
 0x228   : > { %v858_v63 = vpop.trf.xlu1 }
 0x22c   : > { %v859_v0 = vpop.trf.xlu1 }
 0x230   : > { %v860_v1 = vpop.trf.xlu1 }
 0x234   : > { %v861_v2 = vpop.trf.xlu1 }
 0x243   : > { %v2699_v3 = vpop.f32.mrf.mxu1 }
 0x245   : > { %v1819_v4 = vpop.f32.mrf.mxu1 }
 0x247   : > { %v677_v6 = vpop.f32.mrf.mxu0 }
 0x248   : > { %v684_v7 = vsel %vm598_vm6, %v677_v6, 0.0  ;;  %v1082_v8 = vpop.permute.xlu1 %1081 }
 0x249   : > { %v686_v9 = vadd.f32 %v685_v5, %v684_v7  ;;  %v1803_v11 = vpop.f32.mrf.mxu0  ;;  %1239 = vxpose.xlu0.b32.start.end [1/1] (short) (narrow) %v1082_v8, 32 }
 0x24b   : > { %1807 = vmatmul.mubr.msk.f32.vlgmr.msra.gmra.mxu0 %vm500_vm4, %v686_v9 }
 0x24c   : > { %1821 = vmatpush3.msra.mxu0 %v591_v55  ;;  %1822 = vmatprep.mubr.msk.f32.mxu0 %vm500_vm4, %v858_v63  ;;  %v1374_v40 = vpop.permute.xlu1 %1373 }
 0x24d   : > { %1828 = vmatprep.subr.mxu0 %v2319_v10  ;;  %v1377_v24 = vmul.f32 %v1374_v40, %v2680_v56  ;;  %v1376_v45 = vmul.f32 %v1374_v40, %v2687_v57  ;;  %v1379_v48 = vmul.f32 %v1374_v40, %v2660_v51  ;;  %v1378_v52 = vmul.f32 %v1374_v40, %v2670_v54 }
 0x24f   : > { %1823 = vmatmul.mubr.msk.f32.vlgmr.msra.gmra.mxu0 %vm500_vm4, %v859_v0 }
 0x250   : > { %1829 = vmatpush3.xpose.msk.msra.mxu0 %vm604_vm2, %v995_v60  ;;  %1825 = vmatprep.mubr.msk.f32.mxu0 %vm500_vm4, %v860_v1 }
 0x251   : > { %1833 = vmatprep.subr.mxu0 %v2319_v10 }
 0x253   : > { %1826 = vmatmul.mubr.msk.f32.gmra.mxu0 %vm500_vm4, %v861_v2 }
 0x254   : > { %1830 = vmatprep.mubr.msk.f32.mxu0 %vm2320_vm1, %v2319_v10 }
 0x257   : > { %1831 = vmatmul.mubr.msk.f32.vlgmr.msra.gmra.mxu0 %vm604_vm2, %v993_v59 }
 0x258   : > { %1834 = vmatpush3.msra.mxu0 %v1082_v8  ;;  %1835 = vmatprep.mubr.msk.f32.mxu0 %vm2320_vm1, %v2319_v10 }
 0x285   : > { %v1076_v12 = vpop.xlane.xlu0 %1075 }
 0x286   : > { %v1078_v32 = vsel %vm599_vm5, %v1076_v12, 0.0 }
 0x289   : > { %v1273_v13 = vpop.permute.xlu0 %1272 }
 0x28a   : > { %1849 = vmatprep.subr.mxu0 %v1273_v13 }
 0x2b6   : > { %v1235_v15 = vpop.f32.mrf.mxu1 }
 0x2b8   : > { %v1848_v16 = vpop.f32.mrf.mxu1 }
 0x2c5   : > { %v1255_v20 = vpop.trf.xlu0 }
 0x2c9   : > { %v1256_v33 = vpop.trf.xlu0 }
 0x2cd   : > { %v1257_v39 = vpop.trf.xlu0 }
 0x2d1   : > { %v1258_v30 = vpop.trf.xlu0 }
 0x30b   : > { %v756_v17 = vpop.f32.mrf.mxu0 }
 0x30c   : > { %v839_v56 = vadd.f32 %v2699_v3, %v756_v17 }
 0x30d   : > { %v1808_v18 = vpop.f32.mrf.mxu0 }
 0x30f   : > { %v1824_v21 = vpop.f32.mrf.mxu0 }
 0x310   : > { %v980_v22 = vadd.f32 %v1824_v21, %v976_v19 }
 0x311   : > { %v952_v25 = vpop.f32.mrf.mxu0 }
 0x312   : > { %984 = vst.msk [vmem:[#allocation2 + $0x8] sm:$0xff] %vm604_vm2, %v980_v22  ;;  %v979_v10 = vadd.f32 %v975_v23, %v952_v25 }
 0x313   : > { %v1827_v27 = vpop.f32.mrf.mxu0 }
 0x314   : > { %983 = vst.msk [vmem:[#allocation2] sm:$0xff] %vm604_vm2, %v979_v10  ;;  %v982_v28 = vadd.f32 %v1827_v27, %v978_v26 }
 0x315   : > { %v962_v34 = vpop.f32.mrf.mxu0 }
 0x316   : > { %986 = vst.msk [vmem:[#allocation2 + $0x18] sm:$0xff] %vm604_vm2, %v982_v28  ;;  %v981_v35 = vadd.f32 %v977_v31, %v962_v34 }
 0x317   : > { %v1066_v36 = vpop.f32.mrf.mxu0 }
 0x318   : > { %985 = vst.msk [vmem:[#allocation2 + $0x10] sm:$0xff] %vm604_vm2, %v981_v35  ;;  %v1077_v29 = vsel %vm598_vm6, %v1066_v36, 0.0 }
 0x319   : > { %v1079_v37 = vadd.f32 %v1078_v32, %v1077_v29  ;;  %v1832_v38 = vpop.f32.mrf.mxu0 }
 0x31b   : > { %1836 = vmatmul.mubr.msk.f32.vlgmr.msra.gmra.mxu0 %vm500_vm4, %v1079_v37 }
 0x31c   : > { %1850 = vmatpush3.msra.mxu0 %v1273_v13  ;;  %1851 = vmatprep.mubr.msk.f32.mxu0 %vm500_vm4, %v1255_v20 }
 0x31f   : > { %1852 = vmatmul.mubr.msk.f32.vlgmr.msra.gmra.mxu0 %vm500_vm4, %v1256_v33 }
 0x320   : > { %1854 = vmatprep.mubr.msk.f32.mxu0 %vm500_vm4, %v1257_v39 }
 0x323   : > { %1855 = vmatmul.mubr.msk.f32.gmra.mxu0 %vm500_vm4, %v1258_v30 }
 0x3db   : > { %v1153_v41 = vpop.f32.mrf.mxu0 }
 0x3dc   : > { %v1236_v42 = vadd.f32 %v1235_v15, %v1153_v41 }
 0x3dd   : > { %v1837_v14 = vpop.f32.mrf.mxu0 }
 0x3de   : > { %1389 = vrot.lane.b32.xlu1 %v1236_v42, %s2322_s7 }
 0x3df   : > { %v1853_v43 = vpop.f32.mrf.mxu0 }
 0x3e0   : > { %v1381_v44 = vadd.f32 %v1853_v43, %v1377_v24 }
 0x3e1   : > { %v1353_v46 = vpop.f32.mrf.mxu0 }
 0x3e2   : > { %1385 = vst.msk [vmem:[#allocation2 + $0x28] sm:$0xff] %vm604_vm2, %v1381_v44  ;;  %v1380_v47 = vadd.f32 %v1376_v45, %v1353_v46 }
 0x3e3   : > { %v1856_v49 = vpop.f32.mrf.mxu0 }
 0x3e4   : > { %1384 = vst.msk [vmem:[#allocation2 + $0x20] sm:$0xff] %vm604_vm2, %v1380_v47  ;;  %v1383_v50 = vadd.f32 %v1856_v49, %v1379_v48 }
 0x3e5   : > { %v1363_v53 = vpop.f32.mrf.mxu0 }
 0x3e6   : > { %1387 = vst.msk [vmem:[#allocation2 + $0x38] sm:$0xff] %vm604_vm2, %v1383_v50  ;;  %v1382_v55 = vadd.f32 %v1378_v52, %v1363_v53 }
 0x3e8   : > { %1386 = vst.msk [vmem:[#allocation2 + $0x30] sm:$0xff] %vm604_vm2, %v1382_v55 }
 0x450   : > { %v1390_v57 = vpop.permute.xlu1 %1389  ;;  %1399 = sbr.rel (%p1738_p1) target bundleno = 1116 (0x45c), region = 72 }
 0x451   : > { %v1392_v58 = vsel %vm604_vm2, %v839_v56, %v1390_v57 }
 0x452   : > { %v1393_v59 = vpack.c.bf16 %v1392_v58, %v1392_v58 }
 0x454   : > { %1395 = vst.msk [vmem:[%s451_s10] sm:$0xf] %vm1394_vm7, %v1393_v59 }
 0x455   : > { %v1400_v51 = vld [vmem:[#allocation2] sm:$0xff]  ;;  %vm1440_vm8 = vcmask 257024   ;;  %v1401_v54 = vld [vmem:[#allocation2 + $0x8] sm:$0xff]  ;;  %v1402_v60 = vld [vmem:[#allocation2 + $0x10] sm:$0xff] }
 0x456   : > { %v1755_v61 = vpack.c.bf16 %v1400_v51, %v1400_v51  ;;  %v1756_v62 = vpack.c.bf16 %v1401_v54, %v1401_v54  ;;  %v1757_v63 = vpack.c.bf16 %v1402_v60, %v1402_v60  ;;  %v1403_v0 = vld [vmem:[#allocation2 + $0x18] sm:$0xff]  ;;  %v1404_v1 = vld [vmem:[#allocation2 + $0x20] sm:$0xff]  ;;  %v1405_v2 = vld [vmem:[#allocation2 + $0x28] sm:$0xff] }
 0x457   : > { %v1758_v3 = vpack.c.bf16 %v1403_v0, %v1403_v0  ;;  %v1759_v4 = vpack.c.bf16 %v1404_v1, %v1404_v1  ;;  %v1760_v5 = vpack.c.bf16 %v1405_v2, %v1405_v2  ;;  %v1406_v6 = vld [vmem:[#allocation2 + $0x30] sm:$0xff]  ;;  %v1407_v7 = vld [vmem:[#allocation2 + $0x38] sm:$0xff] }
 0x458   : > { %1441 = vst.msk [vmem:[%s2602_s19] sm:$0xf] %vm1440_vm8, %v1755_v61  ;;  %1442 = vst.msk [vmem:[%s2602_s19 + $0x4] sm:$0xf] %vm1440_vm8, %v1756_v62  ;;  %v1761_v8 = vpack.c.bf16 %v1406_v6, %v1406_v6  ;;  %v1762_v9 = vpack.c.bf16 %v1407_v7, %v1407_v7 }
 0x459   : > { %1443 = vst.msk [vmem:[%s2602_s19 + $0x8] sm:$0xf] %vm1440_vm8, %v1757_v63  ;;  %1444 = vst.msk [vmem:[%s2602_s19 + $0xc] sm:$0xf] %vm1440_vm8, %v1758_v3 }
 0x45a   : > { %1445 = vst.msk [vmem:[%s2602_s19 + $0x10] sm:$0xf] %vm1440_vm8, %v1759_v4  ;;  %1446 = vst.msk [vmem:[%s2602_s19 + $0x14] sm:$0xf] %vm1440_vm8, %v1760_v5 }
 0x45b   : > { %1447 = vst.msk [vmem:[%s2602_s19 + $0x18] sm:$0xf] %vm1440_vm8, %v1761_v8  ;;  %1448 = vst.msk [vmem:[%s2602_s19 + $0x1c] sm:$0xf] %vm1440_vm8, %v1762_v9 }
 0x45c PF: > { %s1749_s15 = sshll.u32 %s2298_s8, 1  ;;  %s1470_s6 = sshll.u32 %s451_s10, 4  ;;  %s1471_s6 = int_to_ptr.vmem [resolvable:$true] %s1470_s6 }
 0x45d   : > { %s1466_s27 = sadd.s32 %s2294_s30, %s1749_s15  ;;  %s2924_s17 = sld [smem:[#allocation35_spill]] }
 0x45e   : > { %s1750_s18 = sshll.u32 %s1466_s27, 6  ;;  %s1450_s22 = scalar_lea.sflag [#allocation5], %s2571_s5 }
 0x45f   : > { %s2148_s24 = scalar_lea.vmem %s1471_s6, 64  ;;  %s2323_s12 = smov [#allocation12]  }
 0x460   : > { %p2149_p4 = scmp.ne.s32.totalorder %s1471_s6, %s2148_s24  ;;  %s2152_s14 = sshll.u32 %s2323_s12, 4  ;;  %s2153_s14 = int_to_ptr.vmem [resolvable:$false] %s2152_s14 }
 0x461   : > { %s2154_s9 = scalar_lea.vmem %s2153_s14, 128  ;;  %p2155_p0 = scmp.lt.s32.totalorder %s1471_s6, %s2153_s14 }
 0x462   : > { %p2150_p9 = pnand %p2149_p4, %p2480_p13  ;;  %p2156_p5 = scmp.lt.s32.totalorder %s2154_s9, %s2148_s24 }
 0x463   : > { %s1468_s21 = scalar_lea.hbm %s2924_s17, %s1750_s18 }
 0x464   : > { %p2151_p2 = pneg %p2150_p9  ;;  %p2157_p3 = por %p2156_p5, %p2155_p0 }
 0x466   : > { %p2158_p7 = pnand %p2157_p3, %p2151_p2 }
 0x468   : > { %2161 = shalt.err (!%p2158_p7)
}
 0x469   : > { %s2162_s30 = scalar_lea.hbm %s1468_s21, 64  ;;  %s2166_s10 = scalar_lea.hbm %s2924_s17, 256 }
 0x46a   : > { %p2163_p6 = scmp.ne.s32.totalorder %s1468_s21, %s2162_s30  ;;  %p2167_p11 = scmp.lt.s32.totalorder %s1468_s21, %s2924_s17 }
 0x46b   : > { %p2168_p12 = scmp.lt.s32.totalorder %s2166_s10, %s2162_s30 }
 0x46c   : > { %p2164_p8 = pnand %p2163_p6, %p2480_p13 }
 0x46d   : > { %p2169_p1 = por %p2168_p12, %p2167_p11 }
 0x46e   : > { %p2165_p10 = pneg %p2164_p8 }
 0x470   : > { %p2170_p4 = pnand %p2169_p1, %p2165_p10 }
 0x472   : > { %2173 = shalt.err (!%p2170_p4)
}
 0x473   : > { %s2925_s27 = sld [smem:[#allocation26_spill]]  ;;  %s1763_s18 = sshll.u32 %s2298_s8, 9 }
 0x474   : > { %1869 = dma.vmem_to_hbm [thread:$0]  (%p2480_p13), %s1471_s6, 64, %s1468_s21, %s1450_s22  }
 0x475   : > { %s1483_s20 = sshll.u32 %s2602_s19, 4  ;;  %s2926_s12 = sld [smem:[#allocation36_spill]]  ;;  %s2801_s20 = int_to_ptr.vmem [resolvable:$true] %s1483_s20 }
 0x476   : > { %s2805_s9 = scalar_lea.sflag [#allocation14], %s456_s23  ;;  %s2174_s16 = scalar_lea.vmem %s2801_s20, 512 }
 0x477   : > { %p2175_p9 = scmp.ne.s32.totalorder %s2801_s20, %s2174_s16  ;;  %s2324_s8 = smov [#allocation13]  }
 0x478   : > { %s2178_s19 = sshll.u32 %s2324_s8, 4  ;;  %s2179_s19 = int_to_ptr.vmem [resolvable:$false] %s2178_s19 }
 0x479   : > { %p2927_p2 = scmp.ne.s32.totalorder %s2925_s27, 0  ;;  %s2180_s6 = scalar_lea.vmem %s2179_s19, 1024 }
 0x47a   : > { %p2181_p5 = scmp.lt.s32.totalorder %s2801_s20, %s2179_s19  ;;  %p2182_p3 = scmp.lt.s32.totalorder %s2180_s6, %s2174_s16 }
 0x47b   : > { %s2799_s14 = scalar_lea.hbm %s2926_s12, %s1763_s18  ;;  %p2176_p0 = pnand %p2175_p9, %p2927_p2 }
 0x47c   : > { %p2183_p7 = por %p2182_p3, %p2181_p5 }
 0x47d   : > { %p2177_p13 = pneg %p2176_p0 }
 0x47f   : > { %p2184_p6 = pnand %p2183_p7, %p2177_p13 }
 0x481   : > { %2187 = shalt.err (!%p2184_p6)
}
 0x482   : > { %s2188_s23 = scalar_lea.hbm %s2799_s14, 512  ;;  %s2192_s30 = scalar_lea.hbm %s2926_s12, 1024 }
 0x483   : > { %p2189_p8 = scmp.ne.s32.totalorder %s2799_s14, %s2188_s23  ;;  %p2193_p12 = scmp.lt.s32.totalorder %s2799_s14, %s2926_s12 }
 0x484   : > { %p2194_p1 = scmp.lt.s32.totalorder %s2192_s30, %s2188_s23 }
 0x485   : > { %p2190_p10 = pnand %p2189_p8, %p2927_p2 }
 0x486   : > { %p2195_p4 = por %p2194_p1, %p2193_p12 }
 0x487   : > { %p2191_p11 = pneg %p2190_p10 }
 0x489   : > { %p2196_p9 = pnand %p2195_p4, %p2191_p11 }
 0x48b   : > { %2199 = shalt.err (!%p2196_p9)
}
 0x48c   : > { %s2325_s10 = smov 64   ;;  %s2326_s7 = smov 4  }
 0x48d   : > { %1870 = dma.vmem_to_hbm [thread:$0]  (%p2927_p2), %s2801_s20, 512, %s2799_s14, %s2805_s9, %s2325_s10, %s2325_s10, %s2326_s7  }
 0x48e PF: > { %s2928_s15 = sld [smem:[#allocation22_spill]]  ;;  %p1900_p0 = scmp.ge.s32.totalorder %s2310_s11, 2 }
 0x48f   : > { %s2929_s18 = sld [smem:[#allocation25_spill]] }
 0x494   : > { %s1498_s1 = sand.u32 1, %s2928_s15  }
 0x495   : > { %p2930_p13 = scmp.ne.s32.totalorder %s2929_s18, 0  ;;  %s1499_s24 = scalar_lea.sflag [#allocation5], %s1498_s1 }
 0x497   : > { %p1891_p5 = pnand %p1900_p0, %p2930_p13 }
 0x499   : > { %p1892_p3 = pneg %p1891_p5 }
 0x49b   : > { %2261 = dma.done.wait (%p1892_p3), %s1499_s24, 64  }
 0x49c   : > { %2263 = vsyncadd (%p1892_p3), %s1499_s24, 4294967232  ;;  %s2931_s16 = sld [smem:[#allocation21_spill]] }
 0x49d   : > { %s2932_s8 = sld [smem:[#allocation27_spill]] }
 0x4a2   : > { %s1507_s19 = sand.u32 1, %s2931_s16  }
 0x4a3   : > { %p2933_p7 = scmp.ne.s32.totalorder %s2932_s8, 0  ;;  %s1508_s27 = scalar_lea.sflag [#allocation14], %s1507_s19 }
 0x4a5   : > { %p1894_p6 = pnand %p1900_p0, %p2933_p7 }
 0x4a7   : > { %p1895_p8 = pneg %p1894_p6 }
 0x4a9   : > { %2265 = dma.done.wait (%p1895_p8), %s1508_s27, 512  }
 0x4aa   : > { %2267 = vsyncadd (%p1895_p8), %s1508_s27, 4294966784  ;;  %s33_s11 = sadd.s32 1, %s2310_s11   ;;  %s2934_s20 = sld [smem:[#allocation31_spill]] }
 0x4ab   : > { %p30_p2 = scmp.ge.s32.totalorder %s33_s11, 6   ;;  %s2935_s14 = sld [smem:[#allocation32_spill]] }
 0x4ac   : > { %s2936_s30 = sld [smem:[#allocation23_spill]]  ;;  %s2940_s24 = smov %s2274_s25 }
 0x4ad   : > { %s2937_s8 = sld [smem:[#allocation24_spill]]  ;;  %s2941_s25 = smov %s2278_s26 }
 0x4ae   : > { %s2938_s9 = sld [smem:[#allocation28_spill]]  ;;  %s2943_s27 = smov %s2286_s28 }
 0x4af   : > { %s2939_s10 = sld [smem:[#allocation30_spill]]  ;;  %s2944_s28 = smov %s2290_s29 }
 0x4b0   : > { %s2942_s26 = smov %s2934_s20  ;;  %32 = sbr.rel (!%p30_p2) target bundleno = 20 (0x14), region = 156 }
 0x4b1   : > { %s2945_s29 = smov %s2935_s14 }
 0x4b5   :  { %1513 = vsyncpa [#allocation4], 1 }
 0x4b6   :  { %1515 = vsyncpa [#allocation4 + $0x1], 1 }
 0x4b7   :  { %1516 = vsyncpa [#allocation7], 1 }
 0x4b8   :  { %1518 = vsyncpa [#allocation7 + $0x1], 1 }
 0x4b9   :  { %1519 = vsyncpa [#allocation10], 1 }
 0x4ba   :  { %1521 = vsyncpa [#allocation10 + $0x1], 1 }
 0x4bb   :  { %1522 = vsyncpa [#allocation5], 1 }
 0x4bc   :  { %1524 = vsyncpa [#allocation5 + $0x1], 1 }
 0x4bd   :  { %1525 = vsyncpa [#allocation14], 1 }
 0x4be   :  { %1527 = vsyncpa [#allocation14 + $0x1], 1 }

</bundles_post_ra>
